<compile_context>
chip_gen: v5e
topology: v5e:2x2
jax: 0.10.0
libtpu: 0.0.40
codegen_flags: <defaults>
</compile_context>

<pallas_src>
from math import ceil
from functools import partial

import numpy as np
import jax
import jax.numpy as jnp
from jax import lax
from jax.experimental import pallas as pl
from jax.experimental.pallas import tpu as pltpu

_VMEM_LIMIT = 32 * 1024 * 1024   # safe on v5e/v6e/v7x; blocks here are tiny anyway
_TK_MAX = 4096                   # K tile for the head's weight-streaming matmul
_EPS = 1e-5                      # nn.InstanceNorm2d default eps


# ---------------------------------------------------------------------------
# fused 3x3 / stride-2 / pad-1 conv + bias + ReLU + InstanceNorm2d(affine=False)
# ---------------------------------------------------------------------------
def _conv_fused_kernel(x_ref, w_ref, b_ref, o_ref, *, cout, eps):
    # x_ref: (1, 2*Hh, 2*Wh*Cin) bf16  phase-packed, zero-padded input (one image)
    # w_ref: (3, 2*Wh*Cin, Wo*Cout) bf16  banded "im2col-in-the-weight" matrices
    # b_ref: (1, Wo*Cout) f32  bias pre-tiled to the lane layout
    # o_ref: (1, Ho, Wo*Cout)  lane-dense output tile
    Ho = o_ref.shape[1]
    N = o_ref.shape[2]                      # Wo * Cout
    Wo = N // cout
    Hh = x_ref.shape[1] // 2

    # 3 whole-tile matmuls (one per kernel row di); unrolled at trace time.
    acc = jnp.zeros((Ho, N), jnp.float32)
    for di in range(3):
        base = (di % 2) * Hh + di // 2      # static row offset into the phase planes
        lhs = x_ref[0, base:base + Ho, :]   # (Ho, 2*Wh*Cin) bf16
        acc = acc + jnp.dot(lhs, w_ref[di], preferred_element_type=jnp.float32)

    y = jnp.maximum(acc + b_ref[...], 0.0)  # conv + bias + ReLU, f32

    # InstanceNorm2d: per-channel stats over the Ho x Wo spatial positions.
    # Lane n holds channel n % Cout; reduce/broadcast across the Wo lane-groups
    # with a 0/1 group matrix (two tiny MXU dots; no lane<->sublane reshapes).
    rr = lax.broadcasted_iota(jnp.int32, (N, N), 0)
    cc = lax.broadcasted_iota(jnp.int32, (N, N), 1)
    G = ((rr % cout) == (cc % cout)).astype(jnp.float32)
    inv_n = 1.0 / float(Ho * Wo)
    s = jnp.sum(y, axis=0, keepdims=True)                                  # (1, N)
    ss = jnp.sum(y * y, axis=0, keepdims=True)
    mean = jnp.dot(s, G, preferred_element_type=jnp.float32) * inv_n       # per-lane channel mean
    ex2 = jnp.dot(ss, G, preferred_element_type=jnp.float32) * inv_n
    inv = lax.rsqrt(ex2 - mean * mean + eps)
    o_ref[0] = ((y - mean) * inv).astype(o_ref.dtype)                      # single lane-dense store


def _phase_pack(x):
    """(B, Hi, Wi, Cin) NHWC -> (B, 2*(Ho+1), 2*(Wo+1)*Cin) phase-packed, zero-padded.

    out[b, pr*Hh + q, (pc*Wh + r)*Cin + c] = x_pad[b, 2q+pr, 2r+pc, c]
    where x_pad has the conv's pad=1 border plus trailing zeros.
    """
    B, Hi, Wi, Cin = x.shape
    Ho, Wo = (Hi + 1) // 2, (Wi + 1) // 2
    Hh, Wh = Ho + 1, Wo + 1
    xp = jnp.pad(x, ((0, 0), (1, 2 * Hh - Hi - 1), (1, 2 * Wh - Wi - 1), (0, 0)))
    xp = xp.reshape(B, Hh, 2, Wh, 2, Cin)        # (b, q, pr, r, pc, c)
    xp = xp.transpose(0, 2, 1, 4, 3, 5)          # (b, pr, q, pc, r, c)
    return xp.reshape(B, 2 * Hh, 2 * Wh * Cin), Ho, Wo


def conv3x3_s2_relu_inorm(x, w_banded, b_tiled, *, eps=_EPS, out_dtype=jnp.bfloat16):
    """x: (B, Hi, Wi, Cin) NHWC -> (B, Ho, Wo*Cout) lane-dense, out_dtype."""
    B, Hi, Wi, Cin = x.shape
    xph, Ho, Wo = _phase_pack(x)
    Hh = Ho + 1
    Kx = 2 * (Wo + 1) * Cin
    N = w_banded.shape[2]
    cout = N // Wo
    assert w_banded.shape == (3, Kx, N) and N == Wo * cout, (w_banded.shape, Kx, N, Wo)
    assert b_tiled.shape == (1, N)
    return pl.pallas_call(
        partial(_conv_fused_kernel, cout=cout, eps=eps),
        out_shape=jax.ShapeDtypeStruct((B, Ho, N), out_dtype),
        grid=(B,),
        in_specs=[
            pl.BlockSpec((1, 2 * Hh, Kx), lambda b: (b, 0, 0)),
            pl.BlockSpec((3, Kx, N), lambda b: (0, 0, 0)),   # weights resident across batch
            pl.BlockSpec((1, N), lambda b: (0, 0)),
        ],
        out_specs=pl.BlockSpec((1, Ho, N), lambda b: (b, 0, 0)),
        compiler_params=pltpu.CompilerParams(
            dimension_semantics=("parallel",), vmem_limit_bytes=_VMEM_LIMIT),
    )(xph, w_banded, b_tiled)


# ---------------------------------------------------------------------------
# fused head: (folded embed1 + reward_features) K-tiled matmul + reward_classifier
# ---------------------------------------------------------------------------
def _head_kernel(xm_ref, x2_ref, wf1_ref, wf2_ref, bf_ref, wc_ref, bc_ref,
                 o_ref, acc_ref):
    k = pl.program_id(0)

    @pl.when(k == 0)
    def _init():
        # x_mid contribution (embed1 folded into wf1) initializes the accumulator.
        acc_ref[...] = jnp.dot(xm_ref[...], wf1_ref[...],
                               preferred_element_type=jnp.float32)

    acc_ref[...] += jnp.dot(x2_ref[...], wf2_ref[...],
                            preferred_element_type=jnp.float32)

    @pl.when(k == pl.num_programs(0) - 1)
    def _finalize():
        feat = acc_ref[...] + bf_ref[...]                       # Linear(units, 128)
        o_ref[...] = (jnp.dot(feat, wc_ref[...],
                              preferred_element_type=jnp.float32)
                      + bc_ref[...]).astype(o_ref.dtype)        # Linear(128, 2)


def head_feat_cls(xm_flat, x2_flat, wf1, wf2, bf, wc, bc, *, tk_max=_TK_MAX):
    """xm_flat: (B, U1) bf16, x2_flat: (B, U2) bf16, wf2 pre-padded at init."""
    B, U1 = xm_flat.shape
    U2 = x2_flat.shape[1]
    NF = wf1.shape[1]
    NC = wc.shape[1]
    Up2 = wf2.shape[0]                      # already a TK multiple (padded at init)
    TK = Up2 if Up2 <= tk_max else tk_max
    if Up2 != U2:                           # pad activations only (zero rows are exact)
        x2_flat = jnp.pad(x2_flat, ((0, 0), (0, Up2 - U2)))
    nk = Up2 // TK
    return pl.pallas_call(
        _head_kernel,
        out_shape=jax.ShapeDtypeStruct((B, NC), jnp.float32),
        grid=(nk,),
        in_specs=[
            pl.BlockSpec((B, U1), lambda k: (0, 0)),
            pl.BlockSpec((B, TK), lambda k: (0, k)),
            pl.BlockSpec((U1, NF), lambda k: (0, 0)),
            pl.BlockSpec((TK, NF), lambda k: (k, 0)),
            pl.BlockSpec((1, NF), lambda k: (0, 0)),
            pl.BlockSpec((NF, NC), lambda k: (0, 0)),
            pl.BlockSpec((1, NC), lambda k: (0, 0)),
        ],
        out_specs=pl.BlockSpec((B, NC), lambda k: (0, 0)),
        scratch_shapes=[pltpu.VMEM((B, NF), jnp.float32)],
        compiler_params=pltpu.CompilerParams(
            dimension_semantics=("arbitrary",), vmem_limit_bytes=_VMEM_LIMIT),
    )(xm_flat, x2_flat, wf1, wf2, bf, wc, bc)


# ---------------------------------------------------------------------------
# ModifiedRewardHead forward
# ---------------------------------------------------------------------------
def modified_reward_head_forward(params, x_mid, x_fin):
    B = x_mid.shape[0]
    # NCHW (PyTorch) -> NHWC once. embed1 is folded into the feat weights, so
    # x_mid is flattened directly (NHWC order, matching the permuted weight rows).
    xm_flat = jnp.transpose(x_mid, (0, 2, 3, 1)).reshape(B, -1).astype(jnp.bfloat16)
    xf = jnp.transpose(x_fin, (0, 2, 3, 1)).astype(jnp.float32)
    # ones channel carries embed2's bias exactly through downscale1's zero padding
    xf_aug = jnp.concatenate(
        [xf, jnp.ones(xf.shape[:3] + (1,), xf.dtype)], axis=-1).astype(jnp.bfloat16)

    # TODO(synk): F.dropout (p=0.1, training=True by default in the PyTorch
    # forward) is stochastic; modeled as identity (eval mode) here.
    y1 = conv3x3_s2_relu_inorm(xf_aug, params["down1_wb"], params["down1_b"])
    Wo1 = (x_fin.shape[3] + 1) // 2
    cout1 = y1.shape[2] // Wo1
    y1 = y1.reshape(B, y1.shape[1], Wo1, cout1)          # lane-dense -> NHWC (bitcast)
    y2 = conv3x3_s2_relu_inorm(y1, params["down2_wb"], params["down2_b"])
    x2_flat = y2.reshape(B, -1)                          # NHWC flatten, matches feat2_w rows

    return head_feat_cls(xm_flat, x2_flat, params["featm_w"], params["feat2_w"],
                         params["feat_b"], params["cls_w"], params["cls_b"])


# ---------------------------------------------------------------------------
# init: fold / permute / band the PyTorch-layout weights ONCE
# ---------------------------------------------------------------------------
def _build_banded(w, Wo):
    """w: (3,3,Cin,Cout) -> (3, 2*(Wo+1)*Cin, Wo*Cout) banded conv-as-matmul weights.

    Row index = (pc*Wh + r)*Cin + c matches _phase_pack's lane layout; column
    index = j*Cout + o matches the kernel's lane-dense output layout. Each
    banded entry is exactly one original weight entry (or zero).
    """
    w = np.asarray(w, np.float32)
    _, _, Cin, Cout = w.shape
    Wh = Wo + 1
    bm = np.zeros((3, 2, Wh, Cin, Wo, Cout), np.float32)
    for di in range(3):
        for dj in range(3):
            pc, sh = dj % 2, dj // 2
            for j in range(Wo):
                bm[di, pc, j + sh, :, j, :] += w[di, dj]
    return bm.reshape(3, 2 * Wh * Cin, Wo * Cout)


def init_params(key, input_shape, c1, c2, hidden_size):
    ks = jax.random.split(key, 12)
    H, W = input_shape
    Hs, Ws = ceil(H / 4), ceil(W / 4)
    Ho1, Wo1 = (H + 1) // 2, (W + 1) // 2
    hidden = hidden_size
    h4, h2 = hidden // 4, hidden // 2

    def nrm(k, shape, scale=0.05):
        return scale * jax.random.normal(k, shape, dtype=jnp.float32)

    # "PyTorch-layout" raw weights (what you'd export from the nn.Module):
    #   Conv2d 1x1 -> (Cin, Cout); Conv2d 3x3 -> (kH, kW, Cin, Cout);
    #   Linear -> (in, out); reward_features rows in NCHW cat+flatten order.
    we1 = nrm(ks[0], (c1, hidden)); be1 = nrm(ks[1], (hidden,))
    we2 = nrm(ks[2], (c2, h4));     be2 = nrm(ks[3], (h4,))
    wd1 = nrm(ks[4], (3, 3, h4, h2));     bd1 = nrm(ks[5], (h2,))
    wd2 = nrm(ks[6], (3, 3, h2, hidden)); bd2 = nrm(ks[7], (hidden,))
    U1 = hidden * Hs * Ws
    wf_pt = nrm(ks[8], (2 * U1, 128)); bf = nrm(ks[9], (128,))
    wc = nrm(ks[10], (128, 2));        bc = nrm(ks[11], (2,))

    # --- fold embed2 (1x1 conv + bias) into downscale1 via a ones-channel ---
    waug = jnp.concatenate([we2, be2[None, :]], axis=0)          # (c2+1, h4)
    wd1_eff = jnp.einsum('ae,ijeb->ijab', waug, wd1)             # (3,3,c2+1,h2)

    # --- banded (im2col-in-the-weight) conv matrices + lane-tiled biases ---
    down1_wb = jnp.asarray(_build_banded(wd1_eff, Wo1)).astype(jnp.bfloat16)
    down2_wb = jnp.asarray(_build_banded(wd2, Ws)).astype(jnp.bfloat16)
    down1_b = jnp.tile(bd1, Wo1).reshape(1, Wo1 * h2).astype(jnp.float32)
    down2_b = jnp.tile(bd2, Ws).reshape(1, Ws * hidden).astype(jnp.float32)

    # --- fold embed1 into reward_features (x1 branch is purely linear) ---
    wf1_pt = wf_pt[:U1].reshape(hidden, Hs, Ws, 128)             # rows (ch, h, w)
    wf2_pt = wf_pt[U1:].reshape(hidden, Hs, Ws, 128)
    featm_w = jnp.einsum('ck,khwn->hwcn', we1, wf1_pt).reshape(Hs * Ws * c1, 128)
    feat_b = bf + jnp.einsum('k,khwn->n', be1, wf1_pt)
    # x2 branch rows permuted from NCHW- to NHWC-flatten order (kernel output layout)
    feat2_w = wf2_pt.transpose(1, 2, 0, 3).reshape(U1, 128)
    if U1 > _TK_MAX and U1 % _TK_MAX != 0:                       # pre-pad at init, not per call
        Up2 = ((U1 + _TK_MAX - 1) // _TK_MAX) * _TK_MAX
        feat2_w = jnp.pad(feat2_w, ((0, Up2 - U1), (0, 0)))

    params = {
        "down1_wb": down1_wb, "down1_b": down1_b,
        "down2_wb": down2_wb, "down2_b": down2_b,
        "featm_w": featm_w.astype(jnp.bfloat16),
        "feat2_w": feat2_w.astype(jnp.bfloat16),
        "feat_b": feat_b.reshape(1, 128).astype(jnp.float32),
        "cls_w": wc.astype(jnp.float32),
        "cls_b": bc.reshape(1, 2).astype(jnp.float32),
    }
    raw = {"we1": we1, "be1": be1, "we2": we2, "be2": be2, "wd1": wd1, "bd1": bd1,
           "wd2": wd2, "bd2": bd2, "wf": wf_pt, "bf": bf, "wc": wc, "bc": bc}
    return params, raw


# ---------------------------------------------------------------------------
# pure-JAX (f32) reference of the PyTorch module, for a tolerance check
# ---------------------------------------------------------------------------
def _reference_forward(raw, x_mid, x_fin, eps=_EPS):
    def conv1x1(x, w, b):
        return jnp.einsum('bhwc,cd->bhwd', x, w) + b

    def conv3(x, w, b):
        return lax.conv_general_dilated(
            x, w, (2, 2), ((1, 1), (1, 1)),
            dimension_numbers=('NHWC', 'HWIO', 'NHWC')) + b

    def inorm(x):
        m = jnp.mean(x, axis=(1, 2), keepdims=True)
        v = jnp.mean((x - m) ** 2, axis=(1, 2), keepdims=True)
        return (x - m) * lax.rsqrt(v + eps)

    xm = jnp.transpose(x_mid, (0, 2, 3, 1))
    xf = jnp.transpose(x_fin, (0, 2, 3, 1))
    x1 = conv1x1(xm, raw["we1"], raw["be1"])
    x2 = conv1x1(xf, raw["we2"], raw["be2"])
    x2 = inorm(jnp.maximum(conv3(x2, raw["wd1"], raw["bd1"]), 0.0))
    x2 = inorm(jnp.maximum(conv3(x2, raw["wd2"], raw["bd2"]), 0.0))
    x1f = jnp.transpose(x1, (0, 3, 1, 2)).reshape(x1.shape[0], -1)   # NCHW flatten
    x2f = jnp.transpose(x2, (0, 3, 1, 2)).reshape(x2.shape[0], -1)
    feat = jnp.concatenate([x1f, x2f], axis=1) @ raw["wf"] + raw["bf"]
    return feat @ raw["wc"] + raw["bc"]


if __name__ == "__main__":
    # Small config consistent with the module:
    #   input_shape = spatial size of x_fin; x_mid spatial = ceil(input/4).
    B, c1, c2 = 2, 4, 4
    input_shape = (16, 16)
    hidden_size = 32

    key = jax.random.PRNGKey(0)
    kp, km, kf = jax.random.split(key, 3)
    params, raw = init_params(kp, input_shape, c1, c2, hidden_size)

    Hs, Ws = ceil(input_shape[0] / 4), ceil(input_shape[1] / 4)
    x_mid = jax.random.normal(km, (B, c1, Hs, Ws), dtype=jnp.float32)             # (2, 4, 4, 4)
    x_fin = jax.random.normal(kf, (B, c2, input_shape[0], input_shape[1]),
                              dtype=jnp.float32)                                   # (2, 4, 16, 16)

    fwd = jax.jit(partial(modified_reward_head_forward, params))
    out = fwd(x_mid, x_fin)
    jax.block_until_ready(out)
    assert out.shape == (B, 2), out.shape

    # Tolerance check against the f32 reference (bf16 weights/activations in the
    # kernel path -> expect ~1e-2-level differences, well under this bound).
    ref = _reference_forward(raw, x_mid, x_fin)
    err = float(jnp.max(jnp.abs(out - ref)))
    assert err < 0.25, f"max abs error vs reference: {err}"

    print("KERNEL_OK")
</pallas_src>

<mosaic_0001>
module attributes {stable_mosaic.version = 11 : i64} {
  func.func @_conv_fused_kernel(%arg0: i32, %arg1: memref<1x18x90xbf16, #tpu.memory_space<vmem>>, %arg2: memref<3x90x128xbf16, #tpu.memory_space<vmem>>, %arg3: memref<1x128xf32, #tpu.memory_space<vmem>>, %arg4: memref<1x8x128xbf16, #tpu.memory_space<vmem>>) attributes {dimension_semantics = [#tpu.dimension_semantics<parallel>], iteration_bounds = array<i64: 2>, scalar_prefetch = 0 : i64, scratch_operands = 0 : i64, tpu.core_type = #tpu.core_type<tc>, window_params = [{transform_indices = @transform_0, window_bounds = array<i64: 1, 18, 90>}, {pipeline_mode = #tpu.pipeline_mode<synchronous>, transform_indices = @transform_1, window_bounds = array<i64: 3, 90, 128>}, {pipeline_mode = #tpu.pipeline_mode<synchronous>, transform_indices = @transform_2, window_bounds = array<i64: 1, 128>}, {transform_indices = @transform_3, window_bounds = array<i64: 1, 8, 128>}]} {
    %cst = arith.constant 0.000000e+00 : f32
    %0 = vector.broadcast %cst : f32 to vector<8x128xf32>
    %c0 = arith.constant 0 : index
    %c0_0 = arith.constant 0 : index
    %c0_1 = arith.constant 0 : index
    %1 = vector.load %arg1[%c0, %c0_0, %c0_1] : memref<1x18x90xbf16, #tpu.memory_space<vmem>>, vector<1x8x90xbf16>
    %2 = vector.shape_cast %1 : vector<1x8x90xbf16> to vector<8x90xbf16>
    %c0_2 = arith.constant 0 : index
    %c0_3 = arith.constant 0 : index
    %c0_4 = arith.constant 0 : index
    %3 = vector.load %arg2[%c0_2, %c0_3, %c0_4] : memref<3x90x128xbf16, #tpu.memory_space<vmem>>, vector<1x90x128xbf16>
    %4 = vector.shape_cast %3 : vector<1x90x128xbf16> to vector<90x128xbf16>
    %cst_5 = arith.constant dense<0.000000e+00> : vector<8x128xf32>
    %5 = tpu.matmul %2, %4, %cst_5 {dimension_numbers = #tpu.dot_dimension_numbers<[1], [0], [0], [1], [0, 0, 1, 1], [], []>} : vector<8x90xbf16>, vector<90x128xbf16>, vector<8x128xf32> -> vector<8x128xf32>
    %6 = arith.addf %0, %5 : vector<8x128xf32>
    %c0_6 = arith.constant 0 : index
    %c9 = arith.constant 9 : index
    %c0_7 = arith.constant 0 : index
    %7 = vector.load %arg1[%c0_6, %c9, %c0_7] : memref<1x18x90xbf16, #tpu.memory_space<vmem>>, vector<1x8x90xbf16>
    %8 = vector.shape_cast %7 : vector<1x8x90xbf16> to vector<8x90xbf16>
    %c1 = arith.constant 1 : index
    %c0_8 = arith.constant 0 : index
    %c0_9 = arith.constant 0 : index
    %9 = vector.load %arg2[%c1, %c0_8, %c0_9] : memref<3x90x128xbf16, #tpu.memory_space<vmem>>, vector<1x90x128xbf16>
    %10 = vector.shape_cast %9 : vector<1x90x128xbf16> to vector<90x128xbf16>
    %cst_10 = arith.constant dense<0.000000e+00> : vector<8x128xf32>
    %11 = tpu.matmul %8, %10, %cst_10 {dimension_numbers = #tpu.dot_dimension_numbers<[1], [0], [0], [1], [0, 0, 1, 1], [], []>} : vector<8x90xbf16>, vector<90x128xbf16>, vector<8x128xf32> -> vector<8x128xf32>
    %12 = arith.addf %6, %11 : vector<8x128xf32>
    %c0_11 = arith.constant 0 : index
    %c1_12 = arith.constant 1 : index
    %c0_13 = arith.constant 0 : index
    %13 = vector.load %arg1[%c0_11, %c1_12, %c0_13] : memref<1x18x90xbf16, #tpu.memory_space<vmem>>, vector<1x8x90xbf16>
    %14 = vector.shape_cast %13 : vector<1x8x90xbf16> to vector<8x90xbf16>
    %c2 = arith.constant 2 : index
    %c0_14 = arith.constant 0 : index
    %c0_15 = arith.constant 0 : index
    %15 = vector.load %arg2[%c2, %c0_14, %c0_15] : memref<3x90x128xbf16, #tpu.memory_space<vmem>>, vector<1x90x128xbf16>
    %16 = vector.shape_cast %15 : vector<1x90x128xbf16> to vector<90x128xbf16>
    %cst_16 = arith.constant dense<0.000000e+00> : vector<8x128xf32>
    %17 = tpu.matmul %14, %16, %cst_16 {dimension_numbers = #tpu.dot_dimension_numbers<[1], [0], [0], [1], [0, 0, 1, 1], [], []>} : vector<8x90xbf16>, vector<90x128xbf16>, vector<8x128xf32> -> vector<8x128xf32>
    %18 = arith.addf %12, %17 : vector<8x128xf32>
    %c0_17 = arith.constant 0 : index
    %c0_18 = arith.constant 0 : index
    %19 = vector.load %arg3[%c0_17, %c0_18] : memref<1x128xf32, #tpu.memory_space<vmem>>, vector<1x128xf32>
    %20 = vector.broadcast %19 : vector<1x128xf32> to vector<8x128xf32>
    %21 = arith.addf %18, %20 : vector<8x128xf32>
    %cst_19 = arith.constant 0.000000e+00 : f32
    %22 = vector.broadcast %cst_19 : f32 to vector<8x128xf32>
    %23 = arith.maximumf %21, %22 : vector<8x128xf32>
    %24 = tpu.iota {dimensions = array<i32: 0>} : vector<128x128xi32>
    %25 = tpu.iota {dimensions = array<i32: 1>} : vector<128x128xi32>
    %c16_i32 = arith.constant 16 : i32
    %c0_i32 = arith.constant 0 : i32
    %26 = arith.cmpi eq, %c16_i32, %c0_i32 : i32
    %c1_i32 = arith.constant 1 : i32
    %27 = arith.select %26, %c1_i32, %c16_i32 : i32
    %28 = vector.broadcast %27 : i32 to vector<128x128xi32>
    %29 = arith.remsi %24, %28 : vector<128x128xi32>
    %c0_i32_20 = arith.constant 0 : i32
    %30 = vector.broadcast %c0_i32_20 : i32 to vector<128x128xi32>
    %31 = arith.cmpi ne, %29, %30 : vector<128x128xi32>
    %c0_i32_21 = arith.constant 0 : i32
    %32 = vector.broadcast %c0_i32_21 : i32 to vector<128x128xi32>
    %33 = arith.cmpi slt, %29, %32 : vector<128x128xi32>
    %c0_i32_22 = arith.constant 0 : i32
    %34 = arith.cmpi slt, %27, %c0_i32_22 : i32
    %35 = vector.broadcast %34 : i1 to vector<128x128xi1>
    %36 = vector.broadcast %35 : vector<128x128xi1> to vector<128x128xi1>
    %37 = arith.xori %33, %36 : vector<128x128xi1>
    %38 = arith.andi %37, %31 : vector<128x128xi1>
    %39 = vector.broadcast %27 : i32 to vector<128x128xi32>
    %40 = arith.addi %29, %39 : vector<128x128xi32>
    %41 = arith.select %38, %40, %29 : vector<128x128xi1>, vector<128x128xi32>
    %c16_i32_23 = arith.constant 16 : i32
    %c0_i32_24 = arith.constant 0 : i32
    %42 = arith.cmpi eq, %c16_i32_23, %c0_i32_24 : i32
    %c1_i32_25 = arith.constant 1 : i32
    %43 = arith.select %42, %c1_i32_25, %c16_i32_23 : i32
    %44 = vector.broadcast %43 : i32 to vector<128x128xi32>
    %45 = arith.remsi %25, %44 : vector<128x128xi32>
    %c0_i32_26 = arith.constant 0 : i32
    %46 = vector.broadcast %c0_i32_26 : i32 to vector<128x128xi32>
    %47 = arith.cmpi ne, %45, %46 : vector<128x128xi32>
    %c0_i32_27 = arith.constant 0 : i32
    %48 = vector.broadcast %c0_i32_27 : i32 to vector<128x128xi32>
    %49 = arith.cmpi slt, %45, %48 : vector<128x128xi32>
    %c0_i32_28 = arith.constant 0 : i32
    %50 = arith.cmpi slt, %43, %c0_i32_28 : i32
    %51 = vector.broadcast %50 : i1 to vector<128x128xi1>
    %52 = vector.broadcast %51 : vector<128x128xi1> to vector<128x128xi1>
    %53 = arith.xori %49, %52 : vector<128x128xi1>
    %54 = arith.andi %53, %47 : vector<128x128xi1>
    %55 = vector.broadcast %43 : i32 to vector<128x128xi32>
    %56 = arith.addi %45, %55 : vector<128x128xi32>
    %57 = arith.select %54, %56, %45 : vector<128x128xi1>, vector<128x128xi32>
    %58 = arith.cmpi eq, %41, %57 : vector<128x128xi32>
    %59 = arith.extui %58 : vector<128x128xi1> to vector<128x128xi32>
    %60 = arith.sitofp %59 : vector<128x128xi32> to vector<128x128xf32>
    %cst_29 = arith.constant dense<0.000000e+00> : vector<128xf32>
    %61 = vector.multi_reduction <add>, %23, %cst_29 [0] : vector<8x128xf32> to vector<128xf32>
    %62 = vector.shape_cast %61 : vector<128xf32> to vector<1x128xf32>
    %63 = arith.mulf %23, %23 : vector<8x128xf32>
    %cst_30 = arith.constant dense<0.000000e+00> : vector<128xf32>
    %64 = vector.multi_reduction <add>, %63, %cst_30 [0] : vector<8x128xf32> to vector<128xf32>
    %65 = vector.shape_cast %64 : vector<128xf32> to vector<1x128xf32>
    %cst_31 = arith.constant dense<0.000000e+00> : vector<1x128xf32>
    %66 = tpu.matmul %62, %60, %cst_31 {dimension_numbers = #tpu.dot_dimension_numbers<[1], [0], [0], [1], [0, 0, 1, 1], [], []>} : vector<1x128xf32>, vector<128x128xf32>, vector<1x128xf32> -> vector<1x128xf32>
    %cst_32 = arith.constant 1.562500e-02 : f32
    %67 = vector.broadcast %cst_32 : f32 to vector<1x128xf32>
    %68 = arith.mulf %66, %67 : vector<1x128xf32>
    %cst_33 = arith.constant dense<0.000000e+00> : vector<1x128xf32>
    %69 = tpu.matmul %65, %60, %cst_33 {dimension_numbers = #tpu.dot_dimension_numbers<[1], [0], [0], [1], [0, 0, 1, 1], [], []>} : vector<1x128xf32>, vector<128x128xf32>, vector<1x128xf32> -> vector<1x128xf32>
    %cst_34 = arith.constant 1.562500e-02 : f32
    %70 = vector.broadcast %cst_34 : f32 to vector<1x128xf32>
    %71 = arith.mulf %69, %70 : vector<1x128xf32>
    %72 = arith.mulf %68, %68 : vector<1x128xf32>
    %73 = arith.subf %71, %72 : vector<1x128xf32>
    %cst_35 = arith.constant 9.99999974E-6 : f32
    %74 = vector.broadcast %cst_35 : f32 to vector<1x128xf32>
    %75 = arith.addf %73, %74 : vector<1x128xf32>
    %76 = math.rsqrt %75 : vector<1x128xf32>
    %77 = vector.broadcast %68 : vector<1x128xf32> to vector<8x128xf32>
    %78 = arith.subf %23, %77 : vector<8x128xf32>
    %79 = vector.broadcast %76 : vector<1x128xf32> to vector<8x128xf32>
    %80 = arith.mulf %78, %79 : vector<8x128xf32>
    %81 = arith.truncf %80 : vector<8x128xf32> to vector<8x128xbf16>
    %c0_36 = arith.constant 0 : index
    %c0_37 = arith.constant 0 : index
    %c0_38 = arith.constant 0 : index
    %82 = vector.load %arg4[%c0_36, %c0_37, %c0_38] : memref<1x8x128xbf16, #tpu.memory_space<vmem>>, vector<1x8x128xbf16>
    %83 = vector.shape_cast %82 : vector<1x8x128xbf16> to vector<8x128xbf16>
    %84 = vector.shape_cast %81 : vector<8x128xbf16> to vector<1x8x128xbf16>
    tpu.vector_store %arg4[%c0_36, %c0_37, %c0_38], %84 {strides = array<i32>} : memref<1x8x128xbf16, #tpu.memory_space<vmem>>, vector<1x8x128xbf16>,
    return
  }
  func.func @transform_0(%arg0: i32) -> (i32, i32, i32) {
    %c0_i32 = arith.constant 0 : i32
    %c0_i32_0 = arith.constant 0 : i32
    %c0_i32_1 = arith.constant 0 : i32
    return %arg0, %c0_i32, %c0_i32_0 : i32, i32, i32
  }
  func.func @transform_1(%arg0: i32) -> (i32, i32, i32) {
    %c0_i32 = arith.constant 0 : i32
    %c0_i32_0 = arith.constant 0 : i32
    %c0_i32_1 = arith.constant 0 : i32
    %c0_i32_2 = arith.constant 0 : i32
    return %c0_i32, %c0_i32_0, %c0_i32_1 : i32, i32, i32
  }
  func.func @transform_2(%arg0: i32) -> (i32, i32) {
    %c0_i32 = arith.constant 0 : i32
    %c0_i32_0 = arith.constant 0 : i32
    %c0_i32_1 = arith.constant 0 : i32
    return %c0_i32, %c0_i32_0 : i32, i32
  }
  func.func @transform_3(%arg0: i32) -> (i32, i32, i32) {
    %c0_i32 = arith.constant 0 : i32
    %c0_i32_0 = arith.constant 0 : i32
    %c0_i32_1 = arith.constant 0 : i32
    return %arg0, %c0_i32, %c0_i32_0 : i32, i32, i32
  }
}

module attributes {stable_mosaic.version = 11 : i64} {
  func.func @_conv_fused_kernel(%arg0: i32, %arg1: memref<1x10x160xbf16, #tpu.memory_space<vmem>>, %arg2: memref<3x160x128xbf16, #tpu.memory_space<vmem>>, %arg3: memref<1x128xf32, #tpu.memory_space<vmem>>, %arg4: memref<1x4x128xbf16, #tpu.memory_space<vmem>>) attributes {dimension_semantics = [#tpu.dimension_semantics<parallel>], iteration_bounds = array<i64: 2>, scalar_prefetch = 0 : i64, scratch_operands = 0 : i64, tpu.core_type = #tpu.core_type<tc>, window_params = [{transform_indices = @transform_0, window_bounds = array<i64: 1, 10, 160>}, {pipeline_mode = #tpu.pipeline_mode<synchronous>, transform_indices = @transform_1, window_bounds = array<i64: 3, 160, 128>}, {pipeline_mode = #tpu.pipeline_mode<synchronous>, transform_indices = @transform_2, window_bounds = array<i64: 1, 128>}, {transform_indices = @transform_3, window_bounds = array<i64: 1, 4, 128>}]} {
    %cst = arith.constant 0.000000e+00 : f32
    %0 = vector.broadcast %cst : f32 to vector<4x128xf32>
    %c0 = arith.constant 0 : index
    %c0_0 = arith.constant 0 : index
    %c0_1 = arith.constant 0 : index
    %1 = vector.load %arg1[%c0, %c0_0, %c0_1] : memref<1x10x160xbf16, #tpu.memory_space<vmem>>, vector<1x4x160xbf16>
    %2 = vector.shape_cast %1 : vector<1x4x160xbf16> to vector<4x160xbf16>
    %c0_2 = arith.constant 0 : index
    %c0_3 = arith.constant 0 : index
    %c0_4 = arith.constant 0 : index
    %3 = vector.load %arg2[%c0_2, %c0_3, %c0_4] : memref<3x160x128xbf16, #tpu.memory_space<vmem>>, vector<1x160x128xbf16>
    %4 = vector.shape_cast %3 : vector<1x160x128xbf16> to vector<160x128xbf16>
    %cst_5 = arith.constant dense<0.000000e+00> : vector<4x128xf32>
    %5 = tpu.matmul %2, %4, %cst_5 {dimension_numbers = #tpu.dot_dimension_numbers<[1], [0], [0], [1], [0, 0, 1, 1], [], []>} : vector<4x160xbf16>, vector<160x128xbf16>, vector<4x128xf32> -> vector<4x128xf32>
    %6 = arith.addf %0, %5 : vector<4x128xf32>
    %c0_6 = arith.constant 0 : index
    %c5 = arith.constant 5 : index
    %c0_7 = arith.constant 0 : index
    %7 = vector.load %arg1[%c0_6, %c5, %c0_7] : memref<1x10x160xbf16, #tpu.memory_space<vmem>>, vector<1x4x160xbf16>
    %8 = vector.shape_cast %7 : vector<1x4x160xbf16> to vector<4x160xbf16>
    %c1 = arith.constant 1 : index
    %c0_8 = arith.constant 0 : index
    %c0_9 = arith.constant 0 : index
    %9 = vector.load %arg2[%c1, %c0_8, %c0_9] : memref<3x160x128xbf16, #tpu.memory_space<vmem>>, vector<1x160x128xbf16>
    %10 = vector.shape_cast %9 : vector<1x160x128xbf16> to vector<160x128xbf16>
    %cst_10 = arith.constant dense<0.000000e+00> : vector<4x128xf32>
    %11 = tpu.matmul %8, %10, %cst_10 {dimension_numbers = #tpu.dot_dimension_numbers<[1], [0], [0], [1], [0, 0, 1, 1], [], []>} : vector<4x160xbf16>, vector<160x128xbf16>, vector<4x128xf32> -> vector<4x128xf32>
    %12 = arith.addf %6, %11 : vector<4x128xf32>
    %c0_11 = arith.constant 0 : index
    %c1_12 = arith.constant 1 : index
    %c0_13 = arith.constant 0 : index
    %13 = vector.load %arg1[%c0_11, %c1_12, %c0_13] : memref<1x10x160xbf16, #tpu.memory_space<vmem>>, vector<1x4x160xbf16>
    %14 = vector.shape_cast %13 : vector<1x4x160xbf16> to vector<4x160xbf16>
    %c2 = arith.constant 2 : index
    %c0_14 = arith.constant 0 : index
    %c0_15 = arith.constant 0 : index
    %15 = vector.load %arg2[%c2, %c0_14, %c0_15] : memref<3x160x128xbf16, #tpu.memory_space<vmem>>, vector<1x160x128xbf16>
    %16 = vector.shape_cast %15 : vector<1x160x128xbf16> to vector<160x128xbf16>
    %cst_16 = arith.constant dense<0.000000e+00> : vector<4x128xf32>
    %17 = tpu.matmul %14, %16, %cst_16 {dimension_numbers = #tpu.dot_dimension_numbers<[1], [0], [0], [1], [0, 0, 1, 1], [], []>} : vector<4x160xbf16>, vector<160x128xbf16>, vector<4x128xf32> -> vector<4x128xf32>
    %18 = arith.addf %12, %17 : vector<4x128xf32>
    %c0_17 = arith.constant 0 : index
    %c0_18 = arith.constant 0 : index
    %19 = vector.load %arg3[%c0_17, %c0_18] : memref<1x128xf32, #tpu.memory_space<vmem>>, vector<1x128xf32>
    %20 = vector.broadcast %19 : vector<1x128xf32> to vector<4x128xf32>
    %21 = arith.addf %18, %20 : vector<4x128xf32>
    %cst_19 = arith.constant 0.000000e+00 : f32
    %22 = vector.broadcast %cst_19 : f32 to vector<4x128xf32>
    %23 = arith.maximumf %21, %22 : vector<4x128xf32>
    %24 = tpu.iota {dimensions = array<i32: 0>} : vector<128x128xi32>
    %25 = tpu.iota {dimensions = array<i32: 1>} : vector<128x128xi32>
    %c32_i32 = arith.constant 32 : i32
    %c0_i32 = arith.constant 0 : i32
    %26 = arith.cmpi eq, %c32_i32, %c0_i32 : i32
    %c1_i32 = arith.constant 1 : i32
    %27 = arith.select %26, %c1_i32, %c32_i32 : i32
    %28 = vector.broadcast %27 : i32 to vector<128x128xi32>
    %29 = arith.remsi %24, %28 : vector<128x128xi32>
    %c0_i32_20 = arith.constant 0 : i32
    %30 = vector.broadcast %c0_i32_20 : i32 to vector<128x128xi32>
    %31 = arith.cmpi ne, %29, %30 : vector<128x128xi32>
    %c0_i32_21 = arith.constant 0 : i32
    %32 = vector.broadcast %c0_i32_21 : i32 to vector<128x128xi32>
    %33 = arith.cmpi slt, %29, %32 : vector<128x128xi32>
    %c0_i32_22 = arith.constant 0 : i32
    %34 = arith.cmpi slt, %27, %c0_i32_22 : i32
    %35 = vector.broadcast %34 : i1 to vector<128x128xi1>
    %36 = vector.broadcast %35 : vector<128x128xi1> to vector<128x128xi1>
    %37 = arith.xori %33, %36 : vector<128x128xi1>
    %38 = arith.andi %37, %31 : vector<128x128xi1>
    %39 = vector.broadcast %27 : i32 to vector<128x128xi32>
    %40 = arith.addi %29, %39 : vector<128x128xi32>
    %41 = arith.select %38, %40, %29 : vector<128x128xi1>, vector<128x128xi32>
    %c32_i32_23 = arith.constant 32 : i32
    %c0_i32_24 = arith.constant 0 : i32
    %42 = arith.cmpi eq, %c32_i32_23, %c0_i32_24 : i32
    %c1_i32_25 = arith.constant 1 : i32
    %43 = arith.select %42, %c1_i32_25, %c32_i32_23 : i32
    %44 = vector.broadcast %43 : i32 to vector<128x128xi32>
    %45 = arith.remsi %25, %44 : vector<128x128xi32>
    %c0_i32_26 = arith.constant 0 : i32
    %46 = vector.broadcast %c0_i32_26 : i32 to vector<128x128xi32>
    %47 = arith.cmpi ne, %45, %46 : vector<128x128xi32>
    %c0_i32_27 = arith.constant 0 : i32
    %48 = vector.broadcast %c0_i32_27 : i32 to vector<128x128xi32>
    %49 = arith.cmpi slt, %45, %48 : vector<128x128xi32>
    %c0_i32_28 = arith.constant 0 : i32
    %50 = arith.cmpi slt, %43, %c0_i32_28 : i32
    %51 = vector.broadcast %50 : i1 to vector<128x128xi1>
    %52 = vector.broadcast %51 : vector<128x128xi1> to vector<128x128xi1>
    %53 = arith.xori %49, %52 : vector<128x128xi1>
    %54 = arith.andi %53, %47 : vector<128x128xi1>
    %55 = vector.broadcast %43 : i32 to vector<128x128xi32>
    %56 = arith.addi %45, %55 : vector<128x128xi32>
    %57 = arith.select %54, %56, %45 : vector<128x128xi1>, vector<128x128xi32>
    %58 = arith.cmpi eq, %41, %57 : vector<128x128xi32>
    %59 = arith.extui %58 : vector<128x128xi1> to vector<128x128xi32>
    %60 = arith.sitofp %59 : vector<128x128xi32> to vector<128x128xf32>
    %cst_29 = arith.constant dense<0.000000e+00> : vector<128xf32>
    %61 = vector.multi_reduction <add>, %23, %cst_29 [0] : vector<4x128xf32> to vector<128xf32>
    %62 = vector.shape_cast %61 : vector<128xf32> to vector<1x128xf32>
    %63 = arith.mulf %23, %23 : vector<4x128xf32>
    %cst_30 = arith.constant dense<0.000000e+00> : vector<128xf32>
    %64 = vector.multi_reduction <add>, %63, %cst_30 [0] : vector<4x128xf32> to vector<128xf32>
    %65 = vector.shape_cast %64 : vector<128xf32> to vector<1x128xf32>
    %cst_31 = arith.constant dense<0.000000e+00> : vector<1x128xf32>
    %66 = tpu.matmul %62, %60, %cst_31 {dimension_numbers = #tpu.dot_dimension_numbers<[1], [0], [0], [1], [0, 0, 1, 1], [], []>} : vector<1x128xf32>, vector<128x128xf32>, vector<1x128xf32> -> vector<1x128xf32>
    %cst_32 = arith.constant 6.250000e-02 : f32
    %67 = vector.broadcast %cst_32 : f32 to vector<1x128xf32>
    %68 = arith.mulf %66, %67 : vector<1x128xf32>
    %cst_33 = arith.constant dense<0.000000e+00> : vector<1x128xf32>
    %69 = tpu.matmul %65, %60, %cst_33 {dimension_numbers = #tpu.dot_dimension_numbers<[1], [0], [0], [1], [0, 0, 1, 1], [], []>} : vector<1x128xf32>, vector<128x128xf32>, vector<1x128xf32> -> vector<1x128xf32>
    %cst_34 = arith.constant 6.250000e-02 : f32
    %70 = vector.broadcast %cst_34 : f32 to vector<1x128xf32>
    %71 = arith.mulf %69, %70 : vector<1x128xf32>
    %72 = arith.mulf %68, %68 : vector<1x128xf32>
    %73 = arith.subf %71, %72 : vector<1x128xf32>
    %cst_35 = arith.constant 9.99999974E-6 : f32
    %74 = vector.broadcast %cst_35 : f32 to vector<1x128xf32>
    %75 = arith.addf %73, %74 : vector<1x128xf32>
    %76 = math.rsqrt %75 : vector<1x128xf32>
    %77 = vector.broadcast %68 : vector<1x128xf32> to vector<4x128xf32>
    %78 = arith.subf %23, %77 : vector<4x128xf32>
    %79 = vector.broadcast %76 : vector<1x128xf32> to vector<4x128xf32>
    %80 = arith.mulf %78, %79 : vector<4x128xf32>
    %81 = arith.truncf %80 : vector<4x128xf32> to vector<4x128xbf16>
    %c0_36 = arith.constant 0 : index
    %c0_37 = arith.constant 0 : index
    %c0_38 = arith.constant 0 : index
    %82 = vector.load %arg4[%c0_36, %c0_37, %c0_38] : memref<1x4x128xbf16, #tpu.memory_space<vmem>>, vector<1x4x128xbf16>
    %83 = vector.shape_cast %82 : vector<1x4x128xbf16> to vector<4x128xbf16>
    %84 = vector.shape_cast %81 : vector<4x128xbf16> to vector<1x4x128xbf16>
    tpu.vector_store %arg4[%c0_36, %c0_37, %c0_38], %84 {strides = array<i32>} : memref<1x4x128xbf16, #tpu.memory_space<vmem>>, vector<1x4x128xbf16>,
    return
  }
  func.func @transform_0(%arg0: i32) -> (i32, i32, i32) {
    %c0_i32 = arith.constant 0 : i32
    %c0_i32_0 = arith.constant 0 : i32
    %c0_i32_1 = arith.constant 0 : i32
    return %arg0, %c0_i32, %c0_i32_0 : i32, i32, i32
  }
  func.func @transform_1(%arg0: i32) -> (i32, i32, i32) {
    %c0_i32 = arith.constant 0 : i32
    %c0_i32_0 = arith.constant 0 : i32
    %c0_i32_1 = arith.constant 0 : i32
    %c0_i32_2 = arith.constant 0 : i32
    return %c0_i32, %c0_i32_0, %c0_i32_1 : i32, i32, i32
  }
  func.func @transform_2(%arg0: i32) -> (i32, i32) {
    %c0_i32 = arith.constant 0 : i32
    %c0_i32_0 = arith.constant 0 : i32
    %c0_i32_1 = arith.constant 0 : i32
    return %c0_i32, %c0_i32_0 : i32, i32
  }
  func.func @transform_3(%arg0: i32) -> (i32, i32, i32) {
    %c0_i32 = arith.constant 0 : i32
    %c0_i32_0 = arith.constant 0 : i32
    %c0_i32_1 = arith.constant 0 : i32
    return %arg0, %c0_i32, %c0_i32_0 : i32, i32, i32
  }
}

module attributes {stable_mosaic.version = 11 : i64} {
  func.func @_head_kernel(%arg0: i32, %arg1: memref<2x64xbf16, #tpu.memory_space<vmem>>, %arg2: memref<2x512xbf16, #tpu.memory_space<vmem>>, %arg3: memref<64x128xbf16, #tpu.memory_space<vmem>>, %arg4: memref<512x128xbf16, #tpu.memory_space<vmem>>, %arg5: memref<1x128xf32, #tpu.memory_space<vmem>>, %arg6: memref<128x2xf32, #tpu.memory_space<vmem>>, %arg7: memref<1x2xf32, #tpu.memory_space<vmem>>, %arg8: memref<2x2xf32, #tpu.memory_space<vmem>>, %arg9: memref<2x128xf32, #tpu.memory_space<vmem>>) attributes {dimension_semantics = [#tpu.dimension_semantics<arbitrary>], iteration_bounds = array<i64: 1>, scalar_prefetch = 0 : i64, scratch_operands = 1 : i64, tpu.core_type = #tpu.core_type<tc>, window_params = [{pipeline_mode = #tpu.pipeline_mode<synchronous>, transform_indices = @transform_0, window_bounds = array<i64: 2, 64>}, {transform_indices = @transform_1, window_bounds = array<i64: 2, 512>}, {pipeline_mode = #tpu.pipeline_mode<synchronous>, transform_indices = @transform_2, window_bounds = array<i64: 64, 128>}, {transform_indices = @transform_3, window_bounds = array<i64: 512, 128>}, {pipeline_mode = #tpu.pipeline_mode<synchronous>, transform_indices = @transform_4, window_bounds = array<i64: 1, 128>}, {pipeline_mode = #tpu.pipeline_mode<synchronous>, transform_indices = @transform_5, window_bounds = array<i64: 128, 2>}, {pipeline_mode = #tpu.pipeline_mode<synchronous>, transform_indices = @transform_6, window_bounds = array<i64: 1, 2>}, {pipeline_mode = #tpu.pipeline_mode<synchronous>, transform_indices = @transform_7, window_bounds = array<i64: 2, 2>}]} {
    %c0_i32 = arith.constant 0 : i32
    %0 = arith.cmpi eq, %arg0, %c0_i32 : i32
    %1 = arith.extui %0 : i1 to i32
    %c0_i32_0 = arith.constant 0 : i32
    %2 = arith.cmpi ne, %1, %c0_i32_0 : i32
    scf.if %2 {
      %c0_10 = arith.constant 0 : index
      %c0_11 = arith.constant 0 : index
      %12 = vector.load %arg1[%c0_10, %c0_11] : memref<2x64xbf16, #tpu.memory_space<vmem>>, vector<2x64xbf16>
      %c0_12 = arith.constant 0 : index
      %c0_13 = arith.constant 0 : index
      %13 = vector.load %arg3[%c0_12, %c0_13] : memref<64x128xbf16, #tpu.memory_space<vmem>>, vector<64x128xbf16>
      %cst_14 = arith.constant dense<0.000000e+00> : vector<2x128xf32>
      %14 = tpu.matmul %12, %13, %cst_14 {dimension_numbers = #tpu.dot_dimension_numbers<[1], [0], [0], [1], [0, 0, 1, 1], [], []>} : vector<2x64xbf16>, vector<64x128xbf16>, vector<2x128xf32> -> vector<2x128xf32>
      %c0_15 = arith.constant 0 : index
      %c0_16 = arith.constant 0 : index
      %15 = vector.load %arg9[%c0_15, %c0_16] : memref<2x128xf32, #tpu.memory_space<vmem>>, vector<2x128xf32>
      tpu.vector_store %arg9[%c0_15, %c0_16], %14 {strides = array<i32>} : memref<2x128xf32, #tpu.memory_space<vmem>>, vector<2x128xf32>,
    } else {
    }
    %c0 = arith.constant 0 : index
    %c0_1 = arith.constant 0 : index
    %3 = vector.load %arg9[%c0, %c0_1] : memref<2x128xf32, #tpu.memory_space<vmem>>, vector<2x128xf32>
    %c0_2 = arith.constant 0 : index
    %c0_3 = arith.constant 0 : index
    %4 = vector.load %arg2[%c0_2, %c0_3] : memref<2x512xbf16, #tpu.memory_space<vmem>>, vector<2x512xbf16>
    %c0_4 = arith.constant 0 : index
    %c0_5 = arith.constant 0 : index
    %5 = vector.load %arg4[%c0_4, %c0_5] : memref<512x128xbf16, #tpu.memory_space<vmem>>, vector<512x128xbf16>
    %cst = arith.constant dense<0.000000e+00> : vector<2x128xf32>
    %6 = tpu.matmul %4, %5, %cst {dimension_numbers = #tpu.dot_dimension_numbers<[1], [0], [0], [1], [0, 0, 1, 1], [], []>} : vector<2x512xbf16>, vector<512x128xbf16>, vector<2x128xf32> -> vector<2x128xf32>
    %7 = arith.addf %3, %6 : vector<2x128xf32>
    %c0_6 = arith.constant 0 : index
    %c0_7 = arith.constant 0 : index
    %8 = vector.load %arg9[%c0_6, %c0_7] : memref<2x128xf32, #tpu.memory_space<vmem>>, vector<2x128xf32>
    tpu.vector_store %arg9[%c0_6, %c0_7], %7 {strides = array<i32>} : memref<2x128xf32, #tpu.memory_space<vmem>>, vector<2x128xf32>,
    %c0_i32_8 = arith.constant 0 : i32
    %9 = arith.cmpi eq, %arg0, %c0_i32_8 : i32
    %10 = arith.extui %9 : i1 to i32
    %c0_i32_9 = arith.constant 0 : i32
    %11 = arith.cmpi ne, %10, %c0_i32_9 : i32
    scf.if %11 {
      %c0_10 = arith.constant 0 : index
      %c0_11 = arith.constant 0 : index
      %12 = vector.load %arg9[%c0_10, %c0_11] : memref<2x128xf32, #tpu.memory_space<vmem>>, vector<2x128xf32>
      %c0_12 = arith.constant 0 : index
      %c0_13 = arith.constant 0 : index
      %13 = vector.load %arg5[%c0_12, %c0_13] : memref<1x128xf32, #tpu.memory_space<vmem>>, vector<1x128xf32>
      %14 = vector.broadcast %13 : vector<1x128xf32> to vector<2x128xf32>
      %15 = arith.addf %12, %14 : vector<2x128xf32>
      %c0_14 = arith.constant 0 : index
      %c0_15 = arith.constant 0 : index
      %16 = vector.load %arg6[%c0_14, %c0_15] : memref<128x2xf32, #tpu.memory_space<vmem>>, vector<128x2xf32>
      %cst_16 = arith.constant dense<0.000000e+00> : vector<2x2xf32>
      %17 = tpu.matmul %15, %16, %cst_16 {dimension_numbers = #tpu.dot_dimension_numbers<[1], [0], [0], [1], [0, 0, 1, 1], [], []>} : vector<2x128xf32>, vector<128x2xf32>, vector<2x2xf32> -> vector<2x2xf32>
      %c0_17 = arith.constant 0 : index
      %c0_18 = arith.constant 0 : index
      %18 = vector.load %arg7[%c0_17, %c0_18] : memref<1x2xf32, #tpu.memory_space<vmem>>, vector<1x2xf32>
      %19 = vector.broadcast %18 : vector<1x2xf32> to vector<2x2xf32>
      %20 = arith.addf %17, %19 : vector<2x2xf32>
      %c0_19 = arith.constant 0 : index
      %c0_20 = arith.constant 0 : index
      %21 = vector.load %arg8[%c0_19, %c0_20] : memref<2x2xf32, #tpu.memory_space<vmem>>, vector<2x2xf32>
      tpu.vector_store %arg8[%c0_19, %c0_20], %20 {strides = array<i32>} : memref<2x2xf32, #tpu.memory_space<vmem>>, vector<2x2xf32>,
    } else {
    }
    return
  }
  func.func @transform_0(%arg0: i32) -> (i32, i32) {
    %c0_i32 = arith.constant 0 : i32
    %c0_i32_0 = arith.constant 0 : i32
    %c0_i32_1 = arith.constant 0 : i32
    return %c0_i32, %c0_i32_0 : i32, i32
  }
  func.func @transform_1(%arg0: i32) -> (i32, i32) {
    %c0_i32 = arith.constant 0 : i32
    %c0_i32_0 = arith.constant 0 : i32
    return %c0_i32, %arg0 : i32, i32
  }
  func.func @transform_2(%arg0: i32) -> (i32, i32) {
    %c0_i32 = arith.constant 0 : i32
    %c0_i32_0 = arith.constant 0 : i32
    %c0_i32_1 = arith.constant 0 : i32
    return %c0_i32, %c0_i32_0 : i32, i32
  }
  func.func @transform_3(%arg0: i32) -> (i32, i32) {
    %c0_i32 = arith.constant 0 : i32
    %c0_i32_0 = arith.constant 0 : i32
    return %arg0, %c0_i32 : i32, i32
  }
  func.func @transform_4(%arg0: i32) -> (i32, i32) {
    %c0_i32 = arith.constant 0 : i32
    %c0_i32_0 = arith.constant 0 : i32
    %c0_i32_1 = arith.constant 0 : i32
    return %c0_i32, %c0_i32_0 : i32, i32
  }
  func.func @transform_5(%arg0: i32) -> (i32, i32) {
    %c0_i32 = arith.constant 0 : i32
    %c0_i32_0 = arith.constant 0 : i32
    %c0_i32_1 = arith.constant 0 : i32
    return %c0_i32, %c0_i32_0 : i32, i32
  }
  func.func @transform_6(%arg0: i32) -> (i32, i32) {
    %c0_i32 = arith.constant 0 : i32
    %c0_i32_0 = arith.constant 0 : i32
    %c0_i32_1 = arith.constant 0 : i32
    return %c0_i32, %c0_i32_0 : i32, i32
  }
  func.func @transform_7(%arg0: i32) -> (i32, i32) {
    %c0_i32 = arith.constant 0 : i32
    %c0_i32_0 = arith.constant 0 : i32
    %c0_i32_1 = arith.constant 0 : i32
    return %c0_i32, %c0_i32_0 : i32, i32
  }
}

</mosaic_0001>

<bundles_post_ra>
// kernel: modified_reward_head_forward.3
= control target key start
LH: loop header
LB: loop body
LE: loop exit
PB: predicated region body
PF: predicated region fallthrough
CT: control target
= control target key end

     0   :  { %s1032_s12 = smov 0   ;;  %s1221_s0 = inlined_call_operand.vmem [shape: bf16[2,18,90], index: 0, kind: input, shape index: {}]   ;;  %s1222_s1 = inlined_call_operand.vmem [shape: bf16[3,90,128], index: 1, kind: input, shape index: {}]   ;;  %s1223_s2 = inlined_call_operand.vmem [shape: f32[1,128], index: 2, kind: input, shape index: {}]   ;;  %s1224_s3 = inlined_call_operand.vmem [shape: bf16[2,8,128], index: 3, kind: output, shape index: {}]  }
   0x1 LB: > { %s806_s13 = sadd.s32 4294967295, %s1009_s12   ;;  %p810_p0 = scmp.ge.s32.totalorder %s1009_s12, 1  ;;  %s1009_s12 = sphi %s1032_s12, %s13_s12  }
   0x2   : > { %p137_p1 = scmp.lt.s32.totalorder %s1009_s12, 3 }
   0x4   : > { %p138_p2 = pnand %p810_p0, %p137_p1 }
   0x5   : > { %p160_p3 = scmp.lt.s32.totalorder (!%p138_p2), %s806_s13, 1 }
   0x6   : > { %141 = sbr.rel (%p138_p2) target bundleno = 355 (0x163), region = 32 }
   0xb   : > { %v851_v0 = vld [vmem:[%s1222_s1 + $0x58] sm:$0xf]  ;;  %v982_v1 = vld [vmem:[%s1222_s1 + $0x58] sm:$0x10]  ;;  %vm249_vm0 = vcmask 1044480   ;;  %v408_v2 = vlaneseq  ;;  %v981_v14 = vld [vmem:[%s1222_s1 + $0x50] sm:$0xff] }
   0xc   : > { %v852_v3 = vor.u32 %v982_v1, %v851_v0  ;;  %v876_v4 = vld [vmem:[%s1222_s1 + $0x28] sm:$0xf]  ;;  %v975_v5 = vld [vmem:[%s1222_s1 + $0x28] sm:$0x10]  ;;  %s1232_s13 = smov (!%p160_p3, %s806_s13), 1  ;;  %v974_v16 = vld [vmem:[%s1222_s1 + $0x20] sm:$0xff] }
   0xd   : > { %v917_v6 = vld [vmem:[%s1222_s1 + $0x88] sm:$0xf]  ;;  %v877_v7 = vor.u32 %v975_v5, %v876_v4  ;;  %v989_v8 = vld [vmem:[%s1222_s1 + $0x88] sm:$0x10]  ;;  %v1059_v11 = vshrl.u32 %v408_v2, 7  ;;  %v426_v12 = vand.u32 127, %v408_v2 }
   0xe   : > { %v251_v9 = vsel %vm249_vm0, %v852_v3, 0  ;;  %v918_v10 = vor.u32 %v989_v8, %v917_v6  ;;  %v988_v19 = vld [vmem:[%s1222_s1 + $0x80] sm:$0xff]  ;;  %s990_s5 = smul.u32 12, %s1232_s13  ;;  %v980_v23 = vld [vmem:[%s1222_s1 + $0x48] sm:$0xff]  ;;  %v973_v26 = vld [vmem:[%s1222_s1 + $0x18] sm:$0xff]  ;;  %v1011_v33 = vmov 1.0  }
   0xf   : > { %255 = vmatpush.bf16.msra.mxu0 %v251_v9  ;;  %v305_v13 = vsel %vm249_vm0, %v877_v7, 0  ;;  %v424_v17 = vadd.s32 120, %v1059_v11  ;;  %v1072_v18 = vand.u32 15, %v426_v12  ;;  %v423_v20 = vadd.s32 112, %v1059_v11  ;;  %v987_v30 = vld [vmem:[%s1222_s1 + $0x78] sm:$0xff]  ;;  %v979_v37 = vld [vmem:[%s1222_s1 + $0x40] sm:$0xff] }
  0x10   : > { %309 = vmatpush.bf16.msra.mxu1 %v305_v13  ;;  %v386_v15 = vsel %vm249_vm0, %v918_v10, 0  ;;  %v422_v21 = vadd.s32 104, %v1059_v11  ;;  %s1086_s10 = scalar_lea.vmem %s1221_s0, %s990_s5  ;;  %v972_v38 = vld [vmem:[%s1222_s1 + $0x10] sm:$0xff]  ;;  %v978_v42 = vld [vmem:[%s1222_s1 + $0x38] sm:$0xff]  ;;  %v971_v43 = vld [vmem:[%s1222_s1 + $0x8] sm:$0xff]  ;;  %vm245_vm4 = vcmask 736256  }
  0x11   : > { %390 = vmatpush.bf16.msra.mxu2 %v386_v15  ;;  %v536_v22 = vand.u32 15, %v424_v17  ;;  %v529_v24 = vand.u32 15, %v423_v20  ;;  %v827_v27 = vld [vmem:[%s1086_s10 + $0x4] sm:$0xf]  ;;  %v976_v28 = vld [vmem:[%s1086_s10 + $0x4] sm:$0x10] }
  0x12   : > { %v522_v25 = vand.u32 15, %v422_v21  ;;  %v893_v31 = vld [vmem:[%s1086_s10] sm:$0xf]  ;;  %v983_v32 = vld [vmem:[%s1086_s10] sm:$0x10]  ;;  %v828_v35 = vor.u32 %v976_v28, %v827_v27  ;;  %v986_v40 = vld [vmem:[%s1222_s1 + $0x70] sm:$0xff] }
  0x13   : > { %256 = vmatpush.bf16.msra.mxu0 %v981_v14  ;;  %vm1094_vm1 = vcmp.eq.s32.totalorder %v536_v22, %v1072_v18  ;;  %vm1107_vm2 = vcmp.eq.s32.totalorder %v529_v24, %v1072_v18  ;;  %v894_v39 = vor.u32 %v983_v32, %v893_v31  ;;  %v985_v45 = vld [vmem:[%s1222_s1 + $0x68] sm:$0xff]  ;;  %v977_v48 = vld [vmem:[%s1222_s1 + $0x30] sm:$0xff]  ;;  %v970_v49 = vld [vmem:[%s1222_s1] sm:$0xff]  ;;  %v421_v56 = vadd.s32 96, %v1059_v11 }
  0x14   : > { %310 = vmatpush.bf16.msra.mxu1 %v974_v16  ;;  %936 = vmatpush.msk.msra.mxu3 %vm1094_vm1, %v1011_v33  ;;  %vm1112_vm3 = vcmp.eq.s32.totalorder %v522_v25, %v1072_v18  ;;  %v206_v41 = vshll.u32 %v828_v35, 16  ;;  %v204_v46 = vshrl.u32 %v828_v35, 16  ;;  %v984_v52 = vld [vmem:[%s1222_s1 + $0x60] sm:$0xff]  ;;  %v420_v58 = vadd.s32 88, %v1059_v11 }
  0x15   : > { %391 = vmatpush.bf16.msra.mxu2 %v988_v19  ;;  %v343_v44 = vshll.u32 %v894_v39, 16  ;;  %v341_v50 = vshrl.u32 %v894_v39, 16  ;;  %v170_v54 = vld [vmem:[%s1086_s10] sm:$0xf]  ;;  %v515_v57 = vand.u32 15, %v421_v56  ;;  %v419_v60 = vadd.s32 80, %v1059_v11 }
  0x16   : > { %937 = vmatpush.msk.msra.mxu3 %vm1107_vm2, %v1011_v33  ;;  %v208_v47 = vrot.slane %v206_v41, 1  ;;  %v508_v59 = vand.u32 15, %v420_v58  ;;  %v418_v62 = vadd.s32 72, %v1059_v11  ;;  %v417_v0 = vadd.s32 64, %v1059_v11  ;;  %v1000_v21 = vld [vmem:[%s1223_s2] ss:$0 sm:$0xff] }
  0x17   : > { %257 = vmatpush.bf16.msra.mxu0 %v980_v23  ;;  %v345_v51 = vrot.slane %v343_v44, 1  ;;  %vm643_vm5 = vcmp.eq.s32.totalorder %v515_v57, %v1072_v18  ;;  %v501_v61 = vand.u32 15, %v419_v60  ;;  %v416_v2 = vadd.s32 56, %v1059_v11  ;;  %s812_s10 = sshll.u32 %s1232_s13, 2 }
  0x18   : > { %311 = vmatpush.bf16.msra.mxu1 %v973_v26  ;;  %938 = vmatpush.msk.msra.mxu3 %vm1112_vm3, %v1011_v33  ;;  %v209_v53 = vor.u32 %v208_v47, %v204_v46  ;;  %vm642_vm6 = vcmp.eq.s32.totalorder %v508_v59, %v1072_v18  ;;  %v494_v63 = vand.u32 15, %v418_v62  ;;  %v487_v1 = vand.u32 15, %v417_v0  ;;  %s168_s15 = scalar_lea.vmem %s1224_s3, %s812_s10 }
  0x19   : > { %392 = vmatpush.bf16.msra.mxu2 %v987_v30  ;;  %v346_v55 = vor.u32 %v345_v51, %v341_v50  ;;  %vm641_vm7 = vcmp.eq.s32.totalorder %v501_v61, %v1072_v18  ;;  %v480_v3 = vand.u32 15, %v416_v2  ;;  %v415_v4 = vadd.s32 48, %v1059_v11 }
  0x1a   : > { %939 = vmatpush.msk.msra.mxu3 %vm643_vm5, %v1011_v33  ;;  %vm640_vm8 = vcmp.eq.s32.totalorder %v494_v63, %v1072_v18  ;;  %vm639_vm9 = vcmp.eq.s32.totalorder %v487_v1, %v1072_v18  ;;  %v414_v6 = vadd.s32 40, %v1059_v11  ;;  %v413_v8 = vadd.s32 32, %v1059_v11 }
  0x1b   : > { %258 = vmatpush.bf16.msra.mxu0 %v979_v37  ;;  %vm638_vm10 = vcmp.eq.s32.totalorder %v480_v3, %v1072_v18  ;;  %v473_v5 = vand.u32 15, %v415_v4  ;;  %v412_v10 = vadd.s32 24, %v1059_v11  ;;  %v411_v12 = vadd.s32 16, %v1059_v11 }
  0x1c   : > { %312 = vmatpush.bf16.msra.mxu1 %v972_v38  ;;  %940 = vmatpush.msk.msra.mxu3 %vm642_vm6, %v1011_v33  ;;  %v466_v7 = vand.u32 15, %v414_v6  ;;  %v459_v9 = vand.u32 15, %v413_v8  ;;  %v410_v13 = vadd.s32 8, %v1059_v11  ;;  %v431_v17 = vand.u32 15, %v1059_v11 }
  0x1d   : > { %393 = vmatpush.bf16.msra.mxu2 %v986_v40  ;;  %vm637_vm11 = vcmp.eq.s32.totalorder %v473_v5, %v1072_v18  ;;  %v452_v14 = vand.u32 15, %v412_v10  ;;  %v445_v15 = vand.u32 15, %v411_v12 }
  0x1e   : > { %941 = vmatpush.msk.msra.mxu3 %vm641_vm7, %v1011_v33  ;;  %vm636_vm12 = vcmp.eq.s32.totalorder %v466_v7, %v1072_v18  ;;  %vm635_vm13 = vcmp.eq.s32.totalorder %v459_v9, %v1072_v18  ;;  %v438_v16 = vand.u32 15, %v410_v13 }
  0x1f   : > { %259 = vmatpush.bf16.msra.mxu0 %v978_v42  ;;  %vm634_vm14 = vcmp.eq.s32.totalorder %v452_v14, %v1072_v18  ;;  %vm633_vm15 = vcmp.eq.s32.totalorder %v445_v15, %v1072_v18 }
  0x20   : > { %313 = vmatpush.bf16.msra.mxu1 %v971_v43  ;;  %942 = vmatpush.msk.msra.mxu3 %vm640_vm8, %v1011_v33  ;;  %vm632_vm0 = vcmp.eq.s32.totalorder %v438_v16, %v1072_v18 }
  0x21   : > { %394 = vmatpush.bf16.msra.mxu2 %v985_v45 }
  0x22   : > { %943 = vmatpush.msk.msra.mxu3 %vm639_vm9, %v1011_v33 }
  0x23   : > { %260 = vmatpush.bf16.msra.mxu0 %v977_v48 }
  0x24   : > { %314 = vmatpush.bf16.msra.mxu1 %v970_v49  ;;  %944 = vmatpush.msk.msra.mxu3 %vm638_vm10, %v1011_v33 }
  0x25   : > { %395 = vmatpush.bf16.msra.mxu2 %v984_v52 }
  0x26   : > { %853 = vmatmul.msk.bf16.vlgmr.msra.gmra.mxu0 %vm245_vm4, %v209_v53  ;;  %945 = vmatpush.msk.msra.mxu3 %vm637_vm11, %v1011_v33 }
  0x27   : > { %952 = vmatpush.msk.msrb.mxu0 %vm1094_vm1, %v1011_v33  ;;  %878 = vmatmul.msk.bf16.vlgmr.msra.gmra.mxu1 %vm245_vm4, %v170_v54  ;;  %vm631_vm1 = vcmp.eq.s32.totalorder %v431_v17, %v1072_v18 }
  0x28   : > { %919 = vmatmul.msk.bf16.vlgmr.msra.gmra.mxu2 %vm245_vm4, %v346_v55  ;;  %946 = vmatpush.msk.msra.mxu3 %vm636_vm12, %v1011_v33 }
  0x29   : > { %953 = vmatpush.msk.msrb.mxu0 %vm1107_vm2, %v1011_v33 }
  0x2a   : > { %947 = vmatpush.msk.msra.mxu3 %vm635_vm13, %v1011_v33 }
  0x2b   : > { %954 = vmatpush.msk.msrb.mxu0 %vm1112_vm3, %v1011_v33 }
  0x2c   : > { %948 = vmatpush.msk.msra.mxu3 %vm634_vm14, %v1011_v33 }
  0x2d   : > { %955 = vmatpush.msk.msrb.mxu0 %vm643_vm5, %v1011_v33 }
  0x2e   : > { %949 = vmatpush.msk.msra.mxu3 %vm633_vm15, %v1011_v33 }
  0x2f   : > { %956 = vmatpush.msk.msrb.mxu0 %vm642_vm6, %v1011_v33 }
  0x30   : > { %950 = vmatpush.msk.msra.mxu3 %vm632_vm0, %v1011_v33 }
  0x31   : > { %957 = vmatpush.msk.msrb.mxu0 %vm641_vm7, %v1011_v33 }
  0x32   : > { %951 = vmatpush.msk.msra.mxu3 %vm631_vm1, %v1011_v33 }
  0x33   : > { %958 = vmatpush.msk.msrb.mxu0 %vm640_vm8, %v1011_v33 }
  0x35   : > { %959 = vmatpush.msk.msrb.mxu0 %vm639_vm9, %v1011_v33 }
  0x37   : > { %960 = vmatpush.msk.msrb.mxu0 %vm638_vm10, %v1011_v33 }
  0x39   : > { %961 = vmatpush.msk.msrb.mxu0 %vm637_vm11, %v1011_v33 }
  0x3b   : > { %962 = vmatpush.msk.msrb.mxu0 %vm636_vm12, %v1011_v33 }
  0x3d   : > { %963 = vmatpush.msk.msrb.mxu0 %vm635_vm13, %v1011_v33 }
  0x3f   : > { %964 = vmatpush.msk.msrb.mxu0 %vm634_vm14, %v1011_v33 }
  0x41   : > { %965 = vmatpush.msk.msrb.mxu0 %vm633_vm15, %v1011_v33 }
  0x43   : > { %966 = vmatpush.msk.msrb.mxu0 %vm632_vm0, %v1011_v33 }
  0x45   : > { %967 = vmatpush.msk.msrb.mxu0 %vm631_vm1, %v1011_v33 }
  0xa3   : > { %v262_v11 = vpop.f32.mrf.mxu0 }
  0xa4   : > { %v316_v19 = vpop.f32.mrf.mxu1 }
  0xa5   : > { %v317_v20 = vadd.f32 %v316_v19, %v262_v11 }
  0xab   : > { %v397_v22 = vpop.f32.mrf.mxu2  ;;  %v264_v23 = vpop.f32.mrf.mxu0 }
  0xac   : > { %v401_v24 = vadd.f32 %v397_v22, %v317_v20  ;;  %v318_v25 = vpop.f32.mrf.mxu1 }
  0xae   : > { %v406_v18 = vadd.f32 %v1000_v21, %v401_v24 }
  0xb0   : > { %v407_v26 = vmax.f32 %v406_v18, 0.0 }
  0xb2   : > { %v679_v27 = vrot.slane %v407_v26, 4  ;;  %v685_v28 = vmul.f32 %v407_v26, %v407_v26 }
  0xb3   : > { %v399_v29 = vpop.f32.mrf.mxu2 }
  0xb4   : > { %v680_v30 = vadd.f32 %v679_v27, %v407_v26  ;;  %v686_v31 = vrot.slane %v685_v28, 4 }
  0xb6   : > { %v681_v32 = vrot.slane %v680_v30, 2  ;;  %v687_v33 = vadd.f32 %v686_v31, %v685_v28 }
  0xb8   : > { %v682_v34 = vadd.f32 %v681_v32, %v680_v30  ;;  %v688_v35 = vrot.slane %v687_v33, 2 }
  0xba   : > { %v683_v36 = vrot.slane %v682_v34, 1  ;;  %v689_v37 = vadd.f32 %v688_v35, %v687_v33 }
  0xbc   : > { %v684_v38 = vadd.f32 %v683_v36, %v682_v34  ;;  %v690_v39 = vrot.slane %v689_v37, 1 }
  0xbe   : > { %708 = vmatmul.f32.vlgmr.msra.gmra.mxu3 %v684_v38  ;;  %v691_v40 = vadd.f32 %v690_v39, %v689_v37 }
  0xc0   : > { %729 = vmatmul.f32.vlgmr.msrb.gmra.mxu0 %v691_v40 }
 0x13d   : > { %v730_v41 = vpop.f32.mrf.mxu0 }
 0x13e   : > { %v733_v44 = vmul.f32 0.015625, %v730_v41 }
 0x141   : > { %v709_v42 = vpop.f32.mrf.mxu3 }
 0x142   : > { %v712_v43 = vmul.f32 0.015625, %v709_v42 }
 0x144   : > { %v734_v45 = vmul.f32 %v712_v43, %v712_v43  ;;  %v747_v53 = vperm.slane %v712_v43, 0 }
 0x146   : > { %v735_v46 = vsub.f32 %v733_v44, %v734_v45  ;;  %v748_v56 = vsub.f32 %v407_v26, %v747_v53 }
 0x148   : > { %v736_v47 = vadd.f32 1e-05, %v735_v46 }
 0x14a   : > { %1001 = vrsqrt.f32 %v736_v47  ;;  %vm743_vm3 = vweird.f32 %v736_v47 }
 0x150   : > { %v1002_v48 = vpop.eup %1001 }
 0x151   : > { %v738_v49 = vmul.f32 %v1002_v48, %v736_v47  ;;  %vm744_vm2 = vweird.f32 %v1002_v48 }
 0x152   : > { %vm745_vm4 = vmor %vm743_vm3, %vm744_vm2 }
 0x153   : > { %v739_v50 = vmul.f32 %v1002_v48, %v738_v49 }
 0x155   : > { %v740_v51 = vmul.f32 0.5, %v739_v50 }
 0x157   : > { %v741_v52 = vsub.f32 1.5, %v740_v51 }
 0x159   : > { %v742_v54 = vmul.f32 %v1002_v48, %v741_v52 }
 0x15b   : > { %v746_v55 = vsel %vm745_vm4, %v1002_v48, %v742_v54 }
 0x15c   : > { %v749_v57 = vperm.slane %v746_v55, 0 }
 0x15e   : > { %v750_v58 = vmul.f32 %v749_v57, %v748_v56 }
 0x160   : > { %v751_v59 = vpack.c.bf16 %v750_v58, %v750_v58 }
 0x162   : > { %752 = vst [vmem:[%s168_s15] sm:$0xf] %v751_v59 }
 0x163 PF: > { %s13_s12 = sadd.s32 1, %s1009_s12  }
 0x164   : > { %p10_p4 = scmp.ge.s32.totalorder %s13_s12, 4  }
 0x166   :  { %12 = sbr.rel (!%p10_p4) target bundleno = 1 (0x1), region = 64 }

// kernel: modified_reward_head_forward.4
= control target key start
LH: loop header
LB: loop body
LE: loop exit
PB: predicated region body
PF: predicated region fallthrough
CT: control target
= control target key end

     0   :  { %s1266_s12 = smov 0   ;;  %s1463_s0 = inlined_call_operand.vmem [shape: bf16[2,10,160], index: 0, kind: input, shape index: {}]   ;;  %s1464_s1 = inlined_call_operand.vmem [shape: bf16[3,160,128], index: 1, kind: input, shape index: {}]   ;;  %s1465_s2 = inlined_call_operand.vmem [shape: f32[1,128], index: 2, kind: input, shape index: {}]   ;;  %s1466_s3 = inlined_call_operand.vmem [shape: bf16[2,4,128], index: 3, kind: output, shape index: {}]  }
   0x1 LB: > { %s963_s13 = sadd.s32 4294967295, %s1243_s12   ;;  %p967_p0 = scmp.ge.s32.totalorder %s1243_s12, 1  ;;  %s1243_s12 = sphi %s1266_s12, %s13_s12  }
   0x2   : > { %p137_p1 = scmp.lt.s32.totalorder %s1243_s12, 3 }
   0x4   : > { %p138_p2 = pnand %p967_p0, %p137_p1 }
   0x5   : > { %p160_p3 = scmp.lt.s32.totalorder (!%p138_p2), %s963_s13, 1 }
   0x6   : > { %141 = sbr.rel (%p138_p2) target bundleno = 364 (0x16c), region = 32 }
   0xb   : > { %v1212_v0 = vld [vmem:[%s1464_s1 + $0x88] sm:$0xff]  ;;  %v1214_v1 = vld [vmem:[%s1464_s1 + $0x98] sm:$0xff]  ;;  %v1211_v4 = vld [vmem:[%s1464_s1 + $0x80] sm:$0xff]  ;;  %s1468_s13 = smov (!%p160_p3, %s963_s13), 1  ;;  %vm299_vm0 = vcmask 261120  }
   0xc   : > { %v1200_v2 = vld [vmem:[%s1464_s1 + $0x38] sm:$0xff]  ;;  %v1202_v3 = vld [vmem:[%s1464_s1 + $0x48] sm:$0xff]  ;;  %303 = vmatpush.bf16.msra.mxu0 %v1212_v0  ;;  %322 = vmatpush.bf16.msra.mxu1 %v1214_v1  ;;  %v1213_v5 = vld [vmem:[%s1464_s1 + $0x90] sm:$0xff]  ;;  %s1192_s5 = sshll.u32 %s1468_s13, 4  ;;  %v562_v0 = vlaneseq  ;;  %s970_s30 = sshll.u32 %s1468_s13, 1 }
   0xd   : > { %398 = vmatpush.bf16.msra.mxu2 %v1200_v2  ;;  %417 = vmatpush.bf16.msra.mxu3 %v1202_v3  ;;  %v1199_v6 = vld [vmem:[%s1464_s1 + $0x30] sm:$0xff]  ;;  %v1222_v7 = vld [vmem:[%s1464_s1 + $0xd8] sm:$0xff]  ;;  %v1201_v8 = vld [vmem:[%s1464_s1 + $0x40] sm:$0xff]  ;;  %s1310_s10 = scalar_lea.vmem %s1463_s0, %s1192_s5  ;;  %s168_s6 = scalar_lea.vmem %s1466_s3, %s970_s30 }
   0xe   : > { %v1210_v9 = vld [vmem:[%s1464_s1 + $0x78] sm:$0xff]  ;;  %v1313_v10 = vld [vmem:[%s1310_s10] sm:$0x33]  ;;  %v1203_v11 = vld [vmem:[%s1310_s10 + $0x4] sm:$0xc]  ;;  %v1385_v1 = vshrl.u32 %v562_v0, 7 }
   0xf   : > { %v995_v12 = vld [vmem:[%s1310_s10 + $0x8] sm:$0x10]  ;;  %v331_v14 = vunpack.c.h.b16 %v1313_v10  ;;  %v1221_v17 = vld [vmem:[%s1464_s1 + $0xd0] sm:$0xff]  ;;  %v1223_v21 = vld [vmem:[%s1464_s1 + $0xe0] sm:$0xff]  ;;  %v330_v54 = vunpack.c.l.b16 %v1313_v10  ;;  %v580_v2 = vand.u32 127, %v562_v0 }
  0x10   : > { %304 = vmatpush.bf16.msra.mxu0 %v1211_v4  ;;  %323 = vmatpush.bf16.msra.mxu1 %v1213_v5  ;;  %v1198_v13 = vld [vmem:[%s1464_s1 + $0x28] sm:$0xff]  ;;  %v998_v15 = vor.u32 %v1203_v11, %v995_v12  ;;  %v424_v22 = vld [vmem:[%s1310_s10] sm:$0x77]  ;;  %v1209_v23 = vld [vmem:[%s1464_s1 + $0x70] sm:$0xff]  ;;  %v578_v3 = vadd.s32 120, %v1385_v1  ;;  %v575_v11 = vadd.s32 96, %v1385_v1 }
  0x11   : > { %399 = vmatpush.bf16.msra.mxu2 %v1199_v6  ;;  %v1224_v16 = vld [vmem:[%s1464_s1 + $0xe8] sm:$0xff]  ;;  %418 = vmatpush.bf16.msra.mxu3 %v1201_v8  ;;  %v333_v18 = vpack.c.b16 %v331_v14, %v331_v14  ;;  %v448_v24 = vunpack.c.h.b16 %v424_v22  ;;  %v1197_v25 = vld [vmem:[%s1464_s1 + $0x20] sm:$0xff]  ;;  %v1196_v34 = vld [vmem:[%s1464_s1 + $0x18] sm:$0xff]  ;;  %v447_v42 = vunpack.c.l.b16 %v424_v22  ;;  %v332_v59 = vpack.c.b16 %v330_v54, %v330_v54 }
  0x12   : > { %v231_v19 = vshrl.u32 %v998_v15, 16  ;;  %v234_v20 = vshll.u32 %v998_v15, 16  ;;  %v1220_v28 = vld [vmem:[%s1464_s1 + $0xc8] sm:$0xff]  ;;  %v993_v32 = vld [vmem:[%s1310_s10] sm:$0xc]  ;;  %v1195_v39 = vld [vmem:[%s1464_s1 + $0x10] sm:$0xff] }
  0x13   : > { %v450_v29 = vpack.c.b16 %v448_v24, %v448_v24  ;;  %v1208_v31 = vld [vmem:[%s1464_s1 + $0x68] sm:$0xff]  ;;  %v1219_v36 = vld [vmem:[%s1464_s1 + $0xc0] sm:$0xff]  ;;  %v1218_v43 = vld [vmem:[%s1464_s1 + $0xb8] sm:$0xff]  ;;  %v449_v49 = vpack.c.b16 %v447_v42, %v447_v42  ;;  %v1388_v4 = vand.u32 31, %v580_v2  ;;  %v690_v5 = vand.u32 31, %v578_v3 }
  0x14   : > { %529 = vmatpush.bf16.msrb.mxu1 %v1222_v7  ;;  %305 = vmatpush.bf16.msra.mxu0 %v1210_v9  ;;  %v233_v26 = vrot.slane %v231_v19, 2  ;;  %v236_v27 = vrot.slane %v234_v20, 3  ;;  %v1204_v33 = vld [vmem:[%s1310_s10 + $0x4] sm:$0x10]  ;;  %v1207_v38 = vld [vmem:[%s1464_s1 + $0x60] sm:$0xff]  ;;  %v1206_v46 = vld [vmem:[%s1464_s1 + $0x58] sm:$0xff] }
  0x15   : > { %548 = vmatpush.bf16.msrb.mxu3 %v1224_v16  ;;  %400 = vmatpush.bf16.msra.mxu2 %v1198_v13  ;;  %v461_v35 = vshll.u32 %v450_v29, 16  ;;  %v994_v37 = vor.u32 %v1204_v33, %v993_v32  ;;  %v459_v40 = vshrl.u32 %v450_v29, 16  ;;  %v1194_v47 = vld [vmem:[%s1464_s1 + $0x8] sm:$0xff]  ;;  %v1217_v50 = vld [vmem:[%s1464_s1 + $0xb0] sm:$0xff]  ;;  %v1193_v55 = vld [vmem:[%s1464_s1] sm:$0xff]  ;;  %v454_v56 = vshll.u32 %v449_v49, 16 }
  0x16   : > { %1080 = vmatmul.msk.bf16.vlgmr.msra.gmra.mxu3 %vm299_vm0, %v333_v18  ;;  %v237_v30 = vor.u32 %v236_v27, %v233_v26  ;;  %v1205_v53 = vld [vmem:[%s1464_s1 + $0x50] sm:$0xff]  ;;  %v1216_v57 = vld [vmem:[%s1464_s1 + $0xa8] sm:$0xff]  ;;  %v452_v60 = vshrl.u32 %v449_v49, 16  ;;  %v1215_v62 = vld [vmem:[%s1464_s1 + $0xa0] sm:$0xff]  ;;  %v577_v6 = vadd.s32 112, %v1385_v1  ;;  %vm800_vm1 = vcmp.eq.s32.totalorder %v690_v5, %v1388_v4 }
  0x17   : > { %v463_v41 = vrot.slane %v461_v35, 1  ;;  %v223_v44 = vshrl.u32 %v994_v37, 16  ;;  %v226_v45 = vshll.u32 %v994_v37, 16  ;;  %v456_v61 = vrot.slane %v454_v56, 1 }
  0x18   : > { %530 = vmatpush.bf16.msrb.mxu1 %v1221_v17  ;;  %306 = vmatpush.bf16.msra.mxu0 %v1209_v23  ;;  %v683_v7 = vand.u32 31, %v577_v6  ;;  %v576_v8 = vadd.s32 104, %v1385_v1  ;;  %v1245_v9 = vmov 1.0   ;;  %v669_v12 = vand.u32 31, %v575_v11 }
  0x19   : > { %549 = vmatpush.bf16.msrb.mxu3 %v1223_v21  ;;  %401 = vmatpush.bf16.msra.mxu2 %v1197_v25  ;;  %v464_v48 = vor.u32 %v463_v41, %v459_v40  ;;  %v225_v51 = vrot.slane %v223_v44, 2  ;;  %v228_v52 = vrot.slane %v226_v45, 3  ;;  %v457_v63 = vor.u32 %v456_v61, %v452_v60 }
  0x1a   : > { %1039 = vmatmul.msk.bf16.vlgmr.msra.gmra.mxu1 %vm299_vm0, %v237_v30  ;;  %vm799_vm2 = vcmp.eq.s32.totalorder %v683_v7, %v1388_v4  ;;  %v676_v10 = vand.u32 31, %v576_v8  ;;  %v574_v13 = vadd.s32 88, %v1385_v1  ;;  %vm797_vm4 = vcmp.eq.s32.totalorder %v669_v12, %v1388_v4 }
  0x1b   : > { %v229_v58 = vor.u32 %v228_v52, %v225_v51  ;;  %v573_v15 = vadd.s32 80, %v1385_v1  ;;  %v572_v17 = vadd.s32 72, %v1385_v1  ;;  %v571_v19 = vadd.s32 64, %v1385_v1 }
  0x1c   : > { %531 = vmatpush.bf16.msrb.mxu1 %v1220_v28  ;;  %307 = vmatpush.bf16.msra.mxu0 %v1208_v31  ;;  %vm798_vm3 = vcmp.eq.s32.totalorder %v676_v10, %v1388_v4  ;;  %v662_v14 = vand.u32 31, %v574_v13  ;;  %v570_v21 = vadd.s32 56, %v1385_v1  ;;  %v569_v23 = vadd.s32 48, %v1385_v1 }
  0x1d   : > { %402 = vmatpush.bf16.msra.mxu2 %v1196_v34  ;;  %1158 = vmatpush.msk.msra.mxu3 %vm800_vm1, %v1245_v9  ;;  %v655_v16 = vand.u32 31, %v573_v15  ;;  %v648_v18 = vand.u32 31, %v572_v17  ;;  %v641_v20 = vand.u32 31, %v571_v19  ;;  %v568_v26 = vadd.s32 40, %v1385_v1 }
  0x1e   : > { %vm796_vm5 = vcmp.eq.s32.totalorder %v662_v14, %v1388_v4  ;;  %v634_v22 = vand.u32 31, %v570_v21  ;;  %v627_v25 = vand.u32 31, %v569_v23  ;;  %v567_v29 = vadd.s32 32, %v1385_v1 }
  0x1f   : > { %1159 = vmatpush.msk.msra.mxu3 %vm799_vm2, %v1245_v9  ;;  %vm795_vm6 = vcmp.eq.s32.totalorder %v655_v16, %v1388_v4  ;;  %vm794_vm7 = vcmp.eq.s32.totalorder %v648_v18, %v1388_v4  ;;  %vm793_vm8 = vcmp.eq.s32.totalorder %v641_v20, %v1388_v4  ;;  %v620_v28 = vand.u32 31, %v568_v26 }
  0x20   : > { %532 = vmatpush.bf16.msrb.mxu1 %v1219_v36  ;;  %308 = vmatpush.bf16.msra.mxu0 %v1207_v38  ;;  %vm792_vm9 = vcmp.eq.s32.totalorder %v634_v22, %v1388_v4  ;;  %vm791_vm10 = vcmp.eq.s32.totalorder %v627_v25, %v1388_v4  ;;  %v613_v30 = vand.u32 31, %v567_v29  ;;  %v566_v31 = vadd.s32 24, %v1385_v1 }
  0x21   : > { %403 = vmatpush.bf16.msra.mxu2 %v1195_v39  ;;  %1160 = vmatpush.msk.msra.mxu3 %vm798_vm3, %v1245_v9  ;;  %vm790_vm11 = vcmp.eq.s32.totalorder %v620_v28, %v1388_v4  ;;  %v565_v32 = vadd.s32 16, %v1385_v1  ;;  %v564_v33 = vadd.s32 8, %v1385_v1  ;;  %v585_v38 = vand.u32 31, %v1385_v1 }
  0x22   : > { %vm789_vm12 = vcmp.eq.s32.totalorder %v613_v30, %v1388_v4  ;;  %v606_v34 = vand.u32 31, %v566_v31 }
  0x23   : > { %1161 = vmatpush.msk.msra.mxu3 %vm797_vm4, %v1245_v9  ;;  %v599_v35 = vand.u32 31, %v565_v32  ;;  %v592_v37 = vand.u32 31, %v564_v33 }
  0x24   : > { %533 = vmatpush.bf16.msrb.mxu1 %v1218_v43  ;;  %309 = vmatpush.bf16.msra.mxu0 %v1206_v46  ;;  %vm788_vm13 = vcmp.eq.s32.totalorder %v606_v34, %v1388_v4 }
  0x25   : > { %404 = vmatpush.bf16.msra.mxu2 %v1194_v47  ;;  %1162 = vmatpush.msk.msra.mxu3 %vm796_vm5, %v1245_v9  ;;  %vm787_vm14 = vcmp.eq.s32.totalorder %v599_v35, %v1388_v4  ;;  %vm786_vm15 = vcmp.eq.s32.totalorder %v592_v37, %v1388_v4 }
  0x26   : > { %1141 = vmatmul.msk.bf16.vlgmr.msrb.gmra.mxu3 %vm299_vm0, %v464_v48  ;;  %vm785_vm0 = vcmp.eq.s32.totalorder %v585_v38, %v1388_v4 }
  0x27   : > { %1163 = vmatpush.msk.msra.mxu3 %vm795_vm6, %v1245_v9 }
  0x28   : > { %534 = vmatpush.bf16.msrb.mxu1 %v1217_v50  ;;  %310 = vmatpush.bf16.msra.mxu0 %v1205_v53  ;;  %v1234_v50 = vld [vmem:[%s1465_s2] ss:$0 sm:$0xff] }
  0x29   : > { %405 = vmatpush.bf16.msra.mxu2 %v1193_v55  ;;  %1164 = vmatpush.msk.msra.mxu3 %vm794_vm7, %v1245_v9 }
  0x2b   : > { %311 = vmatmul.bf16.vlgmr.msra.gmra.mxu0 %v229_v58  ;;  %1165 = vmatpush.msk.msra.mxu3 %vm793_vm8, %v1245_v9 }
  0x2c   : > { %535 = vmatpush.bf16.msrb.mxu1 %v1216_v57  ;;  %406 = vmatmul.bf16.vlgmr.msra.gmra.mxu2 %v332_v59 }
  0x2d   : > { %1174 = vmatpush.msk.msrb.mxu0 %vm800_vm1, %v1245_v9  ;;  %1166 = vmatpush.msk.msra.mxu3 %vm792_vm9, %v1245_v9  ;;  %vm833_vm1 = vcmask 1043456  }
  0x2f   : > { %1175 = vmatpush.msk.msrb.mxu0 %vm799_vm2, %v1245_v9  ;;  %1167 = vmatpush.msk.msra.mxu3 %vm791_vm10, %v1245_v9 }
  0x30   : > { %536 = vmatpush.bf16.msrb.mxu1 %v1215_v62 }
  0x31   : > { %1176 = vmatpush.msk.msrb.mxu0 %vm798_vm3, %v1245_v9  ;;  %1168 = vmatpush.msk.msra.mxu3 %vm790_vm11, %v1245_v9 }
  0x33   : > { %537 = vmatmul.bf16.vlgmr.msrb.gmra.mxu1 %v457_v63  ;;  %1177 = vmatpush.msk.msrb.mxu0 %vm797_vm4, %v1245_v9 }
  0x34   : > { %1169 = vmatpush.msk.msra.mxu3 %vm789_vm12, %v1245_v9 }
  0x35   : > { %1178 = vmatpush.msk.msrb.mxu0 %vm796_vm5, %v1245_v9 }
  0x36   : > { %1170 = vmatpush.msk.msra.mxu3 %vm788_vm13, %v1245_v9 }
  0x37   : > { %1179 = vmatpush.msk.msrb.mxu0 %vm795_vm6, %v1245_v9 }
  0x38   : > { %1171 = vmatpush.msk.msra.mxu3 %vm787_vm14, %v1245_v9 }
  0x39   : > { %1180 = vmatpush.msk.msrb.mxu0 %vm794_vm7, %v1245_v9 }
  0x3a   : > { %1172 = vmatpush.msk.msra.mxu3 %vm786_vm15, %v1245_v9 }
  0x3b   : > { %1181 = vmatpush.msk.msrb.mxu0 %vm793_vm8, %v1245_v9 }
  0x3c   : > { %1173 = vmatpush.msk.msra.mxu3 %vm785_vm0, %v1245_v9 }
  0x3d   : > { %1182 = vmatpush.msk.msrb.mxu0 %vm792_vm9, %v1245_v9 }
  0x3f   : > { %1183 = vmatpush.msk.msrb.mxu0 %vm791_vm10, %v1245_v9 }
  0x41   : > { %1184 = vmatpush.msk.msrb.mxu0 %vm790_vm11, %v1245_v9 }
  0x43   : > { %1185 = vmatpush.msk.msrb.mxu0 %vm789_vm12, %v1245_v9 }
  0x45   : > { %1186 = vmatpush.msk.msrb.mxu0 %vm788_vm13, %v1245_v9 }
  0x47   : > { %1187 = vmatpush.msk.msrb.mxu0 %vm787_vm14, %v1245_v9 }
  0x49   : > { %1188 = vmatpush.msk.msrb.mxu0 %vm786_vm15, %v1245_v9 }
  0x4b   : > { %1189 = vmatpush.msk.msrb.mxu0 %vm785_vm0, %v1245_v9 }
  0x97   : > { %v325_v24 = vpop.f32.mrf.mxu1 }
  0x99   : > { %v420_v27 = vpop.f32.mrf.mxu3 }
  0x9f   : > { %v327_v36 = vpop.f32.mrf.mxu1 }
  0xa1   : > { %v422_v39 = vpop.f32.mrf.mxu3 }
  0xa8   : > { %v312_v40 = vpop.f32.mrf.mxu0 }
  0xa9   : > { %v551_v41 = vpop.f32.mrf.mxu3  ;;  %v326_v42 = vadd.f32 %v325_v24, %v312_v40 }
  0xaf   : > { %v407_v44 = vpop.f32.mrf.mxu2 }
  0xb0   : > { %v538_v43 = vpop.f32.mrf.mxu1  ;;  %v408_v46 = vadd.f32 %v407_v44, %v326_v42  ;;  %v314_v47 = vpop.f32.mrf.mxu0 }
  0xb1   : > { %v552_v45 = vadd.f32 %v551_v41, %v538_v43  ;;  %v553_v48 = vpop.f32.mrf.mxu3 }
  0xb2   : > { %v421_v49 = vadd.f32 %v420_v27, %v408_v46 }
  0xb4   : > { %v555_v51 = vadd.f32 %v552_v45, %v421_v49 }
  0xb6   : > { %v560_v52 = vadd.f32 %v1234_v50, %v555_v51 }
  0xb7   : > { %v409_v54 = vpop.f32.mrf.mxu2 }
  0xb8   : > { %v540_v53 = vpop.f32.mrf.mxu1  ;;  %v561_v55 = vmax.f32 %v560_v52, 0.0 }
  0xba   : > { %v834_v56 = vsel %vm833_vm1, %v561_v55, 0.0  ;;  %v841_v57 = vmul.f32 %v561_v55, %v561_v55 }
  0xbb   : > { %v835_v58 = vrot.slane %v834_v56, 4 }
  0xbc   : > { %v842_v59 = vsel %vm833_vm1, %v841_v57, 0.0 }
  0xbd   : > { %v836_v60 = vadd.f32 %v835_v58, %v834_v56  ;;  %v843_v61 = vrot.slane %v842_v59, 4 }
  0xbf   : > { %v837_v62 = vrot.slane %v836_v60, 2  ;;  %v844_v63 = vadd.f32 %v843_v61, %v842_v59 }
  0xc1   : > { %v838_v0 = vadd.f32 %v837_v62, %v836_v60  ;;  %v845_v1 = vrot.slane %v844_v63, 2 }
  0xc3   : > { %v839_v2 = vrot.slane %v838_v0, 1  ;;  %v846_v3 = vadd.f32 %v845_v1, %v844_v63 }
  0xc5   : > { %v840_v4 = vadd.f32 %v839_v2, %v838_v0  ;;  %v847_v5 = vrot.slane %v846_v3, 1 }
  0xc7   : > { %865 = vmatmul.f32.vlgmr.msra.gmra.mxu3 %v840_v4  ;;  %v848_v6 = vadd.f32 %v847_v5, %v846_v3 }
  0xc9   : > { %886 = vmatmul.f32.vlgmr.msrb.gmra.mxu0 %v848_v6 }
 0x146   : > { %v887_v7 = vpop.f32.mrf.mxu0 }
 0x147   : > { %v890_v10 = vmul.f32 0.0625, %v887_v7 }
 0x14a   : > { %v866_v8 = vpop.f32.mrf.mxu3 }
 0x14b   : > { %v869_v9 = vmul.f32 0.0625, %v866_v8 }
 0x14d   : > { %v891_v11 = vmul.f32 %v869_v9, %v869_v9  ;;  %v904_v19 = vperm.slane %v869_v9, 0 }
 0x14f   : > { %v892_v12 = vsub.f32 %v890_v10, %v891_v11  ;;  %v905_v22 = vsub.f32 %v561_v55, %v904_v19 }
 0x151   : > { %v893_v13 = vadd.f32 1e-05, %v892_v12 }
 0x153   : > { %1235 = vrsqrt.f32 %v893_v13  ;;  %vm900_vm3 = vweird.f32 %v893_v13 }
 0x159   : > { %v1236_v14 = vpop.eup %1235 }
 0x15a   : > { %v895_v15 = vmul.f32 %v1236_v14, %v893_v13  ;;  %vm901_vm2 = vweird.f32 %v1236_v14 }
 0x15b   : > { %vm902_vm4 = vmor %vm900_vm3, %vm901_vm2 }
 0x15c   : > { %v896_v16 = vmul.f32 %v1236_v14, %v895_v15 }
 0x15e   : > { %v897_v17 = vmul.f32 0.5, %v896_v16 }
 0x160   : > { %v898_v18 = vsub.f32 1.5, %v897_v17 }
 0x162   : > { %v899_v20 = vmul.f32 %v1236_v14, %v898_v18 }
 0x164   : > { %v903_v21 = vsel %vm902_vm4, %v1236_v14, %v899_v20 }
 0x165   : > { %v906_v23 = vperm.slane %v903_v21, 0 }
 0x167   : > { %v907_v24 = vmul.f32 %v906_v23, %v905_v22 }
 0x169   : > { %v908_v25 = vpack.c.bf16 %v907_v24, %v907_v24 }
 0x16b   : > { %909 = vst [vmem:[%s168_s6] sm:$0x3] %v908_v25 }
 0x16c PF: > { %s13_s12 = sadd.s32 1, %s1243_s12  }
 0x16d   : > { %p10_p4 = scmp.ge.s32.totalorder %s13_s12, 4  }
 0x16f   :  { %12 = sbr.rel (!%p10_p4) target bundleno = 1 (0x1), region = 64 }

// kernel: modified_reward_head_forward.5
= control target key start
LH: loop header
LB: loop body
LE: loop exit
PB: predicated region body
PF: predicated region fallthrough
CT: control target
= control target key end

     0   :  { %s894_s0 = inlined_call_operand.vmem [shape: bf16[2,64], index: 0, kind: input, shape index: {}]   ;;  %s895_s1 = inlined_call_operand.vmem [shape: bf16[2,512], index: 1, kind: input, shape index: {}]   ;;  %s896_s2 = inlined_call_operand.vmem [shape: bf16[64,128], index: 2, kind: input, shape index: {}]   ;;  %s897_s3 = inlined_call_operand.vmem [shape: bf16[512,128], index: 3, kind: input, shape index: {}]   ;;  %s898_s4 = inlined_call_operand.vmem [shape: f32[1,128], index: 4, kind: input, shape index: {}]   ;;  %s899_s5 = inlined_call_operand.vmem [shape: f32[128,2], index: 5, kind: input, shape index: {}]   ;;  %s900_s6 = inlined_call_operand.vmem [shape: f32[1,2], index: 6, kind: input, shape index: {}]   ;;  %s901_s7 = inlined_call_operand.hbm [shape: f32[2,2], index: 7, kind: output, shape index: {}]  }
   0x1   :  { %v620_v0 = vld [vmem:[%s896_s2 + $0x18] sm:$0xff]  ;;  %v619_v4 = vld [vmem:[%s896_s2 + $0x10] sm:$0xff]  ;;  %v618_v8 = vld [vmem:[%s896_s2 + $0x8] sm:$0xff] }
   0x2   :  { %v636_v1 = vld [vmem:[%s897_s3 + $0x78] sm:$0xff]  ;;  %73 = vmatpush.bf16.msra.mxu0 %v620_v0  ;;  %v635_v5 = vld [vmem:[%s897_s3 + $0x70] sm:$0xff]  ;;  %v634_v9 = vld [vmem:[%s897_s3 + $0x68] sm:$0xff] }
   0x3   :  { %v644_v2 = vld [vmem:[%s897_s3 + $0xb8] sm:$0xff]  ;;  %364 = vmatpush.bf16.msra.mxu2 %v636_v1  ;;  %v643_v6 = vld [vmem:[%s897_s3 + $0xb0] sm:$0xff]  ;;  %v642_v10 = vld [vmem:[%s897_s3 + $0xa8] sm:$0xff] }
   0x4   :  { %v628_v3 = vld [vmem:[%s897_s3 + $0x38] sm:$0xff]  ;;  %377 = vmatpush.bf16.msra.mxu3 %v644_v2  ;;  %v627_v7 = vld [vmem:[%s897_s3 + $0x30] sm:$0xff]  ;;  %v626_v11 = vld [vmem:[%s897_s3 + $0x28] sm:$0xff] }
   0x5   :  { %351 = vmatpush.bf16.msra.mxu1 %v628_v3  ;;  %v617_v12 = vld [vmem:[%s896_s2] sm:$0xff]  ;;  %v652_v17 = vld [vmem:[%s897_s3 + $0xf8] sm:$0xff] }
   0x6   :  { %74 = vmatpush.bf16.msra.mxu0 %v619_v4  ;;  %v633_v13 = vld [vmem:[%s897_s3 + $0x60] sm:$0xff] }
   0x7   :  { %365 = vmatpush.bf16.msra.mxu2 %v635_v5  ;;  %v641_v14 = vld [vmem:[%s897_s3 + $0xa0] sm:$0xff] }
   0x8   :  { %378 = vmatpush.bf16.msra.mxu3 %v643_v6  ;;  %v625_v15 = vld [vmem:[%s897_s3 + $0x20] sm:$0xff] }
   0x9   :  { %352 = vmatpush.bf16.msra.mxu1 %v627_v7  ;;  %v84_v16 = vld [vmem:[%s895_s1] sm:$0xf] }
   0xa   :  { %75 = vmatpush.bf16.msra.mxu0 %v618_v8  ;;  %150 = vst [vmem:[#allocation1] ss:$9 sm:$0xff] %v84_v16 }
   0xb   :  { %366 = vmatpush.bf16.msra.mxu2 %v634_v9 }
   0xc   :  { %379 = vmatpush.bf16.msra.mxu3 %v642_v10 }
   0xd   :  { %353 = vmatpush.bf16.msra.mxu1 %v626_v11 }
   0xe   :  { %12 = vsyncpa [#allocation4], 0  ;;  %76 = vmatpush.bf16.msra.mxu0 %v617_v12  ;;  %v632_v18 = vld [vmem:[%s897_s3 + $0x58] sm:$0xff]  ;;  %v32_v19 = vld [vmem:[%s894_s0] sm:$0x1]  ;;  %vm65_vm0 = vcmask 523264  }
   0xf   :  { %367 = vmatpush.bf16.msra.mxu2 %v633_v13  ;;  %v640_v20 = vld [vmem:[%s897_s3 + $0x98] sm:$0xff]  ;;  %v651_v22 = vld [vmem:[%s897_s3 + $0xf0] sm:$0xff]  ;;  %v650_v26 = vld [vmem:[%s897_s3 + $0xe8] sm:$0xff]  ;;  %s463_s2 = sshll.u32 %s901_s7, 4  ;;  %vm454_vm1 = vcmask 9216   ;;  %s464_s2 = int_to_ptr.hbm [resolvable:$true] %s463_s2 }
  0x10   :  { %380 = vmatpush.bf16.msra.mxu3 %v641_v14  ;;  %v624_v21 = vld [vmem:[%s897_s3 + $0x18] sm:$0xff]  ;;  %v631_v23 = vld [vmem:[%s897_s3 + $0x50] sm:$0xff]  ;;  %v630_v27 = vld [vmem:[%s897_s3 + $0x48] sm:$0xff] }
  0x11   :  { %354 = vmatpush.bf16.msra.mxu1 %v625_v15  ;;  %488 = vmatmul.msk.bf16.vlgmr.msra.gmra.mxu0 %vm65_vm0, %v32_v19  ;;  %v639_v24 = vld [vmem:[%s897_s3 + $0x90] sm:$0xff]  ;;  %v638_v28 = vld [vmem:[%s897_s3 + $0x88] sm:$0xff]  ;;  %v649_v30 = vld [vmem:[%s897_s3 + $0xe0] sm:$0xff] }
  0x12   :  { %390 = vmatpush.bf16.msrb.mxu0 %v652_v17  ;;  %v623_v25 = vld [vmem:[%s897_s3 + $0x10] sm:$0xff]  ;;  %v622_v29 = vld [vmem:[%s897_s3 + $0x8] sm:$0xff]  ;;  %v629_v31 = vld [vmem:[%s897_s3 + $0x40] sm:$0xff] }
  0x13   :  { %368 = vmatpush.bf16.msra.mxu2 %v632_v18  ;;  %v637_v32 = vld [vmem:[%s897_s3 + $0x80] sm:$0xff]  ;;  %v648_v34 = vld [vmem:[%s897_s3 + $0xd8] sm:$0xff]  ;;  %v152_v35 = vld [vmem:[#allocation1 + $0x9] sm:$0xff] }
  0x14   :  { %381 = vmatpush.bf16.msra.mxu3 %v640_v20  ;;  %v621_v33 = vld [vmem:[%s897_s3] sm:$0xff]  ;;  %v153_v36 = vld [vmem:[#allocation1 + $0x12] sm:$0xff]  ;;  %v646_v39 = vld [vmem:[%s897_s3 + $0xc8] sm:$0xff] }
  0x15   :  { %355 = vmatpush.bf16.msra.mxu1 %v624_v21  ;;  %v151_v37 = vld [vmem:[#allocation1] sm:$0xff]  ;;  %v647_v38 = vld [vmem:[%s897_s3 + $0xd0] sm:$0xff]  ;;  %v429_v42 = vld [vmem:[%s899_s5 + $0x78] sm:$0xff] }
  0x16   :  { %391 = vmatpush.bf16.msrb.mxu0 %v651_v22  ;;  %v645_v40 = vld [vmem:[%s897_s3 + $0xc0] sm:$0xff]  ;;  %v428_v43 = vld [vmem:[%s899_s5 + $0x70] sm:$0xff]  ;;  %v427_v44 = vld [vmem:[%s899_s5 + $0x68] sm:$0xff]  ;;  %s682_s3 = smov [#allocation3]  }
  0x17   :  { %369 = vmatpush.bf16.msra.mxu2 %v631_v23  ;;  %v154_v41 = vld [vmem:[#allocation1 + $0x1b] sm:$0xff]  ;;  %v424_v47 = vld [vmem:[%s899_s5 + $0x50] sm:$0xff]  ;;  %v423_v48 = vld [vmem:[%s899_s5 + $0x48] sm:$0xff]  ;;  %s461_s10 = sshll.u32 %s682_s3, 4  ;;  %s462_s10 = int_to_ptr.vmem [resolvable:$true] %s461_s10 }
  0x18   :  { %382 = vmatpush.bf16.msra.mxu3 %v639_v24  ;;  %v426_v45 = vld [vmem:[%s899_s5 + $0x60] sm:$0xff]  ;;  %v425_v46 = vld [vmem:[%s899_s5 + $0x58] sm:$0xff]  ;;  %v420_v51 = vld [vmem:[%s899_s5 + $0x30] sm:$0xff] }
  0x19   :  { %356 = vmatpush.bf16.msra.mxu1 %v623_v25  ;;  %v422_v49 = vld [vmem:[%s899_s5 + $0x40] sm:$0xff]  ;;  %v421_v50 = vld [vmem:[%s899_s5 + $0x38] sm:$0xff]  ;;  %v419_v53 = vld [vmem:[%s899_s5 + $0x28] sm:$0xff] }
  0x1a   :  { %392 = vmatpush.bf16.msrb.mxu0 %v650_v26  ;;  %v418_v54 = vld [vmem:[%s899_s5 + $0x20] sm:$0xff]  ;;  %v417_v55 = vld [vmem:[%s899_s5 + $0x18] sm:$0xff]  ;;  %v416_v56 = vld [vmem:[%s899_s5 + $0x10] sm:$0xff] }
  0x1b   :  { %370 = vmatpush.bf16.msra.mxu2 %v630_v27  ;;  %v415_v57 = vld [vmem:[%s899_s5 + $0x8] sm:$0xff]  ;;  %v414_v59 = vld [vmem:[%s899_s5] sm:$0xff] }
  0x1c   :  { %383 = vmatpush.bf16.msra.mxu3 %v638_v28  ;;  %v654_v9 = vld [vmem:[%s898_s4] ss:$0 sm:$0xff] }
  0x1d   :  { %357 = vmatpush.bf16.msra.mxu1 %v622_v29  ;;  %v655_v12 = vld [vmem:[%s900_s6] ss:$0 sm:$0xff] }
  0x1e   :  { %393 = vmatpush.bf16.msrb.mxu0 %v649_v30 }
  0x1f   :  { %371 = vmatpush.bf16.msra.mxu2 %v629_v31 }
  0x20   :  { %384 = vmatpush.bf16.msra.mxu3 %v637_v32 }
  0x21   :  { %358 = vmatpush.bf16.msra.mxu1 %v621_v33 }
  0x22   :  { %394 = vmatpush.bf16.msrb.mxu0 %v648_v34  ;;  %372 = vmatmul.bf16.vlgmr.msra.gmra.mxu2 %v152_v35 }
  0x23   :  { %385 = vmatmul.bf16.vlgmr.msra.gmra.mxu3 %v153_v36 }
  0x24   :  { %359 = vmatmul.bf16.vlgmr.msra.gmra.mxu1 %v151_v37 }
  0x25   :  { %434 = vmatpush.msrb.mxu1 %v429_v42 }
  0x26   :  { %395 = vmatpush.bf16.msrb.mxu0 %v647_v38 }
  0x27   :  { %435 = vmatpush.msrb.mxu1 %v428_v43 }
  0x29   :  { %436 = vmatpush.msrb.mxu1 %v427_v44 }
  0x2a   :  { %396 = vmatpush.bf16.msrb.mxu0 %v646_v39 }
  0x2b   :  { %437 = vmatpush.msrb.mxu1 %v426_v45 }
  0x2d   :  { %438 = vmatpush.msrb.mxu1 %v425_v46 }
  0x2e   :  { %397 = vmatpush.bf16.msrb.mxu0 %v645_v40 }
  0x2f   :  { %439 = vmatpush.msrb.mxu1 %v424_v47 }
  0x31   :  { %398 = vmatmul.bf16.vlgmr.msrb.gmra.mxu0 %v154_v41  ;;  %440 = vmatpush.msrb.mxu1 %v423_v48 }
  0x33   :  { %441 = vmatpush.msrb.mxu1 %v422_v49 }
  0x35   :  { %442 = vmatpush.msrb.mxu1 %v421_v50 }
  0x37   :  { %443 = vmatpush.msrb.mxu1 %v420_v51 }
  0x39   :  { %444 = vmatpush.msrb.mxu1 %v419_v53 }
  0x3b   :  { %445 = vmatpush.msrb.mxu1 %v418_v54 }
  0x3d   :  { %446 = vmatpush.msrb.mxu1 %v417_v55 }
  0x3f   :  { %447 = vmatpush.msrb.mxu1 %v416_v56 }
  0x41   :  { %448 = vmatpush.msrb.mxu1 %v415_v57 }
  0x43   :  { %449 = vmatpush.msrb.mxu1 %v414_v59 }
  0x8e   :  { %v78_v52 = vpop.f32.mrf.mxu0 }
  0x8f   :  { %82 = vst [vmem:[#allocation2] sm:$0x3] %v78_v52 }
  0x96   :  { %v80_v58 = vpop.f32.mrf.mxu0  ;;  %v83_v6 = vld [vmem:[#allocation2] sm:$0x3] }
  0xa1   :  { %v360_v60 = vpop.f32.mrf.mxu1 }
  0xa5   :  { %v373_v61 = vpop.f32.mrf.mxu2 }
  0xa6   :  { %v374_v62 = vadd.f32 %v373_v61, %v360_v60  ;;  %v386_v63 = vpop.f32.mrf.mxu3 }
  0xa8   :  { %v387_v1 = vadd.f32 %v386_v63, %v374_v62 }
  0xa9   :  { %v362_v0 = vpop.f32.mrf.mxu1 }
  0xad   :  { %v375_v3 = vpop.f32.mrf.mxu2 }
  0xae   :  { %v399_v2 = vpop.f32.mrf.mxu0  ;;  %v388_v5 = vpop.f32.mrf.mxu3 }
  0xaf   :  { %v400_v4 = vadd.f32 %v399_v2, %v387_v1 }
  0xb1   :  { %v403_v7 = vadd.f32 %v400_v4, %v83_v6 }
  0xb3   :  { %404 = vst [vmem:[#allocation2] sm:$0x3] %v403_v7 }
  0xb6   :  { %v401_v8 = vpop.f32.mrf.mxu0 }
  0xba   :  { %v408_v10 = vld [vmem:[#allocation2] sm:$0x3] }
  0xbb   :  { %v413_v11 = vadd.f32 %v654_v9, %v408_v10 }
  0xbd   :  { %450 = vmatmul.f32.vlgmr.msrb.gmra.mxu1 %v413_v11 }
 0x13a   :  { %v451_v13 = vpop.f32.mrf.mxu1 }
 0x13b   :  { %v452_v14 = vadd.f32 %v655_v12, %v451_v13 }
 0x13d   :  { %455 = vst.msk [vmem:[#allocation3] sm:$0x3] %vm454_vm1, %v452_v14 }
 0x13e   :  { %466 = dma.vmem_to_hbm [thread:$0]  %s462_s10, 32, %s464_s2, [#allocation4]  }
 0x13f   :  { %680 = dma.done.wait [#allocation4], 32  }
 0x140   :  { %681 = vsyncadd [#allocation4], 4294967264 }
 0x141   :  { %471 = vsyncpa [#allocation4], 1 }

</bundles_post_ra>
